<compile_context>
chip_gen: v5e
topology: v5e:2x2
jax: 0.10.0
libtpu: 0.0.40
codegen_flags: <defaults>
</compile_context>

<pallas_src>
import functools

import jax
import jax.numpy as jnp
from jax.experimental import pallas as pl
from jax.experimental.pallas import tpu as pltpu

BN_EPS = 1e-5
_VMEM_LIMIT = 48 * 1024 * 1024   # leaves headroom on v7x's 64 MiB physical VMEM


def _round_up(x, m):
    return (x + m - 1) // m * m


def _apply_act(y, act):
    if act == "elu":   # F.elu (alpha=1); exp rides the EUP slot.
        # TODO(synk): jnp.expm1 would be marginally more accurate near 0.
        return jnp.where(y > 0, y, jnp.exp(jnp.minimum(y, 0.0)) - 1.0)
    if act == "relu":
        return jnp.maximum(y, 0.0)
    return y


# ----------------------------------------------------------------------------
# Fused matmul + per-channel affine + activation
# ----------------------------------------------------------------------------
def _matmul_ep_kernel(a_ref, b_ref, s_ref, c_ref, o_ref, *, act):
    """Single-K-block kernel: o = act((A @ B) * scale + bias)."""
    acc = jnp.dot(a_ref[...].astype(jnp.bfloat16), b_ref[...],
                  preferred_element_type=jnp.float32)
    y = acc * s_ref[...] + c_ref[...]
    o_ref[...] = _apply_act(y, act).astype(o_ref.dtype)


def _matmul_acc_kernel(a_ref, b_ref, s_ref, c_ref, o_ref, acc_ref, *, act):
    """Multi-K-block fallback with an f32 VMEM accumulator."""
    @pl.when(pl.program_id(1) == 0)
    def _():
        acc_ref[...] = jnp.zeros_like(acc_ref)

    acc_ref[...] += jnp.dot(a_ref[...].astype(jnp.bfloat16), b_ref[...],
                            preferred_element_type=jnp.float32)

    @pl.when(pl.program_id(1) == pl.num_programs(1) - 1)
    def _():
        y = acc_ref[...] * s_ref[...] + c_ref[...]
        o_ref[...] = _apply_act(y, act).astype(o_ref.dtype)


def _choose_tm(M, tm_max=1024):
    """Row-tile choice: multiple of 8, >=2 grid blocks when possible (keeps
    both v7x TensorCores busy), large tiles, minimal padding."""
    if M <= 256:
        half = _round_up(max((M + 1) // 2, 8), 8)
        if M % half == 0 and M // half >= 2:
            return half, M
        return M, M                       # one full-extent block, no padding
    tm = min(tm_max, _round_up((M + 1) // 2, 8))
    return tm, _round_up(M, tm)


def fused_matmul_affine_act(a, b, scale, bias, *, act="elu",
                            out_dtype=jnp.float32, tm_max=1024):
    """out = act((a @ b) * scale + bias) in one Pallas pass.

    a: (M, K) activations (f32 or bf16; cast to bf16 inside the kernel),
    b: (K, N) weights, scale/bias: (N,) folded conv-bias + eval-mode BN.
    """
    M, K = a.shape
    K2, N = b.shape
    assert K == K2
    b = b.astype(jnp.bfloat16)
    s = scale.reshape(1, N).astype(jnp.float32)
    c = bias.reshape(1, N).astype(jnp.float32)

    tm, Mp = _choose_tm(M, tm_max)
    if Mp != M:
        a = jnp.pad(a, ((0, Mp - M), (0, 0)))

    single_k = (K <= 1024) or (K % 128 != 0)
    if single_k:
        out = pl.pallas_call(
            functools.partial(_matmul_ep_kernel, act=act),
            out_shape=jax.ShapeDtypeStruct((Mp, N), out_dtype),
            grid_spec=pltpu.PrefetchScalarGridSpec(
                num_scalar_prefetch=0,
                grid=(Mp // tm,),
                in_specs=[
                    pl.BlockSpec((tm, K), lambda i: (i, 0)),
                    pl.BlockSpec((K, N), lambda i: (0, 0)),
                    pl.BlockSpec((1, N), lambda i: (0, 0)),
                    pl.BlockSpec((1, N), lambda i: (0, 0)),
                ],
                out_specs=pl.BlockSpec((tm, N), lambda i: (i, 0)),
            ),
            compiler_params=pltpu.CompilerParams(
                dimension_semantics=("parallel",),
                vmem_limit_bytes=_VMEM_LIMIT),
        )(a, b, s, c)
    else:
        tk = 512
        while K % tk:
            tk //= 2
        out = pl.pallas_call(
            functools.partial(_matmul_acc_kernel, act=act),
            out_shape=jax.ShapeDtypeStruct((Mp, N), out_dtype),
            grid_spec=pltpu.PrefetchScalarGridSpec(
                num_scalar_prefetch=0,
                grid=(Mp // tm, K // tk),
                in_specs=[
                    pl.BlockSpec((tm, tk), lambda i, k: (i, k)),
                    pl.BlockSpec((tk, N), lambda i, k: (k, 0)),
                    pl.BlockSpec((1, N), lambda i, k: (0, 0)),
                    pl.BlockSpec((1, N), lambda i, k: (0, 0)),
                ],
                out_specs=pl.BlockSpec((tm, N), lambda i, k: (i, 0)),
                scratch_shapes=[pltpu.VMEM((tm, N), jnp.float32)],
            ),
            compiler_params=pltpu.CompilerParams(
                dimension_semantics=("parallel", "arbitrary"),
                vmem_limit_bytes=_VMEM_LIMIT),
        )(a, b, s, c)
    return out[:M] if Mp != M else out


# ----------------------------------------------------------------------------
# Fused stride-2 3x3 ConvTranspose + BN + ELU (single pallas_call)
# ----------------------------------------------------------------------------
def _deconv_subpixel_kernel(x_ref, b_ref, s_ref, c_ref, o_ref, *, act):
    """One image per grid step.  x_ref: (1, H, W, C); b_ref: (4, C, 4*Cout);
    o_ref: (1, H*W, 4*Cout) with columns [y(2i,2j)|y(2i,2j+1)|y(2i+1,2j)|
    y(2i+1,2j+1)].  Shifted taps are built in VMEM: x is read from HBM once."""
    x = x_ref[0].astype(jnp.bfloat16)                    # (H, W, C)
    H, W, C = x.shape
    zc = jnp.zeros((H, 1, C), x.dtype)
    zr = jnp.zeros((1, W, C), x.dtype)
    x01 = jnp.concatenate([x[:, 1:, :], zc], axis=1)     # x[i, j+1]
    x10 = jnp.concatenate([x[1:, :, :], zr], axis=0)     # x[i+1, j]
    x11 = jnp.concatenate([x10[:, 1:, :], zc], axis=1)   # x[i+1, j+1]
    M = H * W
    acc = jnp.dot(x.reshape(M, C), b_ref[0], preferred_element_type=jnp.float32)
    acc += jnp.dot(x01.reshape(M, C), b_ref[1], preferred_element_type=jnp.float32)
    acc += jnp.dot(x10.reshape(M, C), b_ref[2], preferred_element_type=jnp.float32)
    acc += jnp.dot(x11.reshape(M, C), b_ref[3], preferred_element_type=jnp.float32)
    y = acc * s_ref[...] + c_ref[...]
    o_ref[0] = _apply_act(y, act).astype(o_ref.dtype)


def deconv3x3_s2_bn_act(x, w, scale, bias, *, act="elu", out_dtype=jnp.bfloat16):
    """ConvTranspose2d(k=3, s=2, p=1, output_padding=1) + BN + ELU, fused.

    w: conv-equivalent (spatially flipped) HWIO weight (3, 3, C, Cout).
    Sub-pixel decomposition:
      y00 = x00 Wf[1,1]
      y01 = x00 Wf[1,0] + x01 Wf[1,2]
      y10 = x00 Wf[0,1] + x10 Wf[2,1]
      y11 = x00 Wf[0,0] + x01 Wf[0,2] + x10 Wf[2,0] + x11 Wf[2,2]
    Returns (N, H*W, 4*Cout) in sub-pixel-packed layout (pixel shuffle deferred).
    """
    N, H, W, C = x.shape
    Cout = w.shape[-1]
    z = jnp.zeros((C, Cout), w.dtype)
    b_taps = jnp.stack([
        jnp.concatenate([w[1, 1], w[1, 0], w[0, 1], w[0, 0]], axis=1),
        jnp.concatenate([z,       w[1, 2], z,       w[0, 2]], axis=1),
        jnp.concatenate([z,       z,       w[2, 1], w[2, 0]], axis=1),
        jnp.concatenate([z,       z,       z,       w[2, 2]], axis=1),
    ], axis=0).astype(jnp.bfloat16)                          # (4, C, 4*Cout)
    s = jnp.tile(scale, 4).reshape(1, 4 * Cout).astype(jnp.float32)
    c = jnp.tile(bias, 4).reshape(1, 4 * Cout).astype(jnp.float32)

    # TODO(synk): very large images (whole-image tile beyond a few MiB) would
    # need the H axis split with a 1-row halo; whole-image tiles are used here.
    return pl.pallas_call(
        functools.partial(_deconv_subpixel_kernel, act=act),
        out_shape=jax.ShapeDtypeStruct((N, H * W, 4 * Cout), out_dtype),
        grid_spec=pltpu.PrefetchScalarGridSpec(
            num_scalar_prefetch=0,
            grid=(N,),
            in_specs=[
                pl.BlockSpec((1, H, W, C), lambda n: (n, 0, 0, 0)),
                pl.BlockSpec((4, C, 4 * Cout), lambda n: (0, 0, 0)),
                pl.BlockSpec((1, 4 * Cout), lambda n: (0, 0)),
                pl.BlockSpec((1, 4 * Cout), lambda n: (0, 0)),
            ],
            out_specs=pl.BlockSpec((1, H * W, 4 * Cout), lambda n: (n, 0, 0)),
        ),
        compiler_params=pltpu.CompilerParams(
            dimension_semantics=("parallel",),
            vmem_limit_bytes=_VMEM_LIMIT),
    )(x, b_taps, s, c)


# ----------------------------------------------------------------------------
# Parameter folding / helpers
# ----------------------------------------------------------------------------
def _fold_bn(unit):
    """Fold conv-bias + eval-mode BatchNorm (running_mean=0, running_var=1)
    into a per-channel (scale, bias) applied inside the matmul epilogue."""
    cout = unit["w"].shape[-1]
    scale = jnp.ones((cout,), jnp.float32)
    bias = jnp.zeros((cout,), jnp.float32)
    if unit.get("b") is not None:
        bias = bias + unit["b"]
    if unit.get("bn") is not None:
        gamma, beta = unit["bn"]
        s = gamma / jnp.sqrt(1.0 + BN_EPS)
        scale = scale * s
        bias = bias * s + beta
    return scale, bias


def _blockdiag4(w):
    """(C, F) -> block-diagonal (4C, 4F): applies the same 1x1 conv to each of
    the 4 packed sub-pixel groups in one matmul (lane-dense 4F output)."""
    C, F = w.shape
    z = jnp.zeros((C, F), w.dtype)
    rows = [jnp.concatenate([w if j == i else z for j in range(4)], axis=1)
            for i in range(4)]
    return jnp.concatenate(rows, axis=0)


# ----------------------------------------------------------------------------
# Parameters (deterministic synthetic init matching the PyTorch module's init)
# ----------------------------------------------------------------------------
class _KeyGen:
    def __init__(self, key):
        self._key = key

    def __call__(self):
        self._key, k = jax.random.split(self._key)
        return k


def _kaiming_uniform(key, shape, fan_in):
    bound = (6.0 / fan_in) ** 0.5
    return jax.random.uniform(key, shape, jnp.float32, -bound, bound)


def _make_conv(kg, kh, kw, cin, cout):
    # Conv weight: kaiming_uniform_; bias: zeros; BN: gamma~N(1,0.02), beta=0.
    w = _kaiming_uniform(kg(), (kh, kw, cin, cout), kh * kw * cin)
    gamma = 1.0 + 0.02 * jax.random.normal(kg(), (cout,), jnp.float32)
    beta = jnp.zeros((cout,), jnp.float32)
    return dict(w=w, b=jnp.zeros((cout,), jnp.float32), bn=(gamma, beta))


def make_params(key, in_channels, n_filters):
    kg = _KeyGen(key)
    cmid = in_channels // 4
    return dict(
        conv1=_make_conv(kg, 1, 1, in_channels, cmid),
        # ConvTranspose2d weights are stored directly in their conv-equivalent
        # (spatially flipped) HWIO layout.
        # TODO(synk): a trained PyTorch checkpoint needs IOHW->HWIO permutation
        # + spatial flip before use here.
        deconv2=_make_conv(kg, 3, 3, cmid, cmid),
        conv3=_make_conv(kg, 1, 1, cmid, n_filters),
    )


# ----------------------------------------------------------------------------
# Forward pass (mirrors DecoderBlock.forward) + pure-JAX reference
# ----------------------------------------------------------------------------
def decoder_block_forward(params, x_nchw):
    N, Cin, H, W = x_nchw.shape
    p1, p2, p3 = params["conv1"], params["deconv2"], params["conv3"]
    cmid = p1["w"].shape[-1]
    nf = p3["w"].shape[-1]

    # TODO(synk): the NCHW->NHWC transpose could be folded into the conv1
    # kernel with an in-kernel (XLU) transpose; kept as a single XLA pass here.
    x = jnp.transpose(x_nchw, (0, 2, 3, 1)).astype(jnp.float32)      # NHWC

    # conv1 (1x1) + BN + ELU -> bf16 intermediate.
    s1, c1 = _fold_bn(p1)
    h1 = fused_matmul_affine_act(
        x.reshape(N * H * W, Cin), p1["w"].reshape(Cin, cmid), s1, c1,
        act="elu", out_dtype=jnp.bfloat16).reshape(N, H, W, cmid)

    # deconv2 (3x3, stride 2) + BN + ELU: one fused kernel, packed bf16 output.
    s2, c2 = _fold_bn(p2)
    h2 = deconv3x3_s2_bn_act(h1, p2["w"], s2, c2, act="elu",
                             out_dtype=jnp.bfloat16)                 # (N, H*W, 4*cmid)

    # conv3 (1x1) + BN + ELU on the packed layout via a block-diagonal weight.
    s3, c3 = _fold_bn(p3)
    h3 = fused_matmul_affine_act(
        h2.reshape(N * H * W, 4 * cmid),
        _blockdiag4(p3["w"].reshape(cmid, nf)),
        jnp.tile(s3, 4), jnp.tile(c3, 4), act="elu", out_dtype=jnp.float32)

    # Single pixel-shuffle merged into the (required) NHWC->NCHW transpose.
    y = h3.reshape(N, H, W, 2, 2, nf)           # (n, h, w, a, b, f)
    y = jnp.transpose(y, (0, 5, 1, 3, 2, 4))    # (n, f, h, a, w, b)
    return y.reshape(N, nf, 2 * H, 2 * W)


def decoder_block_reference(params, x_nchw):
    """Pure-JAX f32 reference (lax convs), eval-mode BN. For validation only."""
    x = jnp.transpose(x_nchw, (0, 2, 3, 1)).astype(jnp.float32)

    def conv(x, unit, padding="VALID", lhs_dilation=None):
        y = jax.lax.conv_general_dilated(
            x, unit["w"], window_strides=(1, 1), padding=padding,
            lhs_dilation=lhs_dilation,
            dimension_numbers=("NHWC", "HWIO", "NHWC"),
            precision=jax.lax.Precision.HIGHEST)
        scale, bias = _fold_bn(unit)
        return jax.nn.elu(y * scale + bias)

    x = conv(x, params["conv1"])
    x = conv(x, params["deconv2"], padding=((1, 2), (1, 2)), lhs_dilation=(2, 2))
    x = conv(x, params["conv3"])
    return jnp.transpose(x, (0, 3, 1, 2))


if __name__ == "__main__":
    key = jax.random.PRNGKey(0)
    pkey, xkey = jax.random.split(key)
    in_channels, n_filters = 64, 32
    params = make_params(pkey, in_channels, n_filters)
    # NCHW input, like the PyTorch module. Small smoke-test shape.
    x = jax.random.normal(xkey, (2, in_channels, 16, 16), jnp.float32)

    fwd = jax.jit(decoder_block_forward)
    out = fwd(params, x)
    jax.block_until_ready(out)

    assert out.shape == (2, n_filters, 32, 32), out.shape
    assert bool(jnp.isfinite(out).all())

    # Correctness vs. the f32 reference (bf16 MXU operands -> relaxed tolerance).
    ref = jax.jit(decoder_block_reference)(params, x)
    jax.block_until_ready(ref)
    err = float(jnp.max(jnp.abs(out - ref)) / (jnp.max(jnp.abs(ref)) + 1e-6))
    assert err < 5e-2, f"max relative error {err}"

    print("KERNEL_OK")
</pallas_src>

<mosaic_0001>
module attributes {stable_mosaic.version = 11 : i64} {
  func.func @_deconv_subpixel_kernel(%arg0: i32, %arg1: memref<1x16x16x16xbf16, #tpu.memory_space<vmem>>, %arg2: memref<4x16x64xbf16, #tpu.memory_space<vmem>>, %arg3: memref<1x64xf32, #tpu.memory_space<vmem>>, %arg4: memref<1x64xf32, #tpu.memory_space<vmem>>, %arg5: memref<1x256x64xbf16, #tpu.memory_space<vmem>>) attributes {dimension_semantics = [#tpu.dimension_semantics<parallel>], iteration_bounds = array<i64: 2>, scalar_prefetch = 0 : i64, scratch_operands = 0 : i64, tpu.core_type = #tpu.core_type<tc>, window_params = [{transform_indices = @transform_0, window_bounds = array<i64: 1, 16, 16, 16>}, {pipeline_mode = #tpu.pipeline_mode<synchronous>, transform_indices = @transform_1, window_bounds = array<i64: 4, 16, 64>}, {pipeline_mode = #tpu.pipeline_mode<synchronous>, transform_indices = @transform_2, window_bounds = array<i64: 1, 64>}, {pipeline_mode = #tpu.pipeline_mode<synchronous>, transform_indices = @transform_3, window_bounds = array<i64: 1, 64>}, {transform_indices = @transform_4, window_bounds = array<i64: 1, 256, 64>}]} {
    %c0 = arith.constant 0 : index
    %c0_0 = arith.constant 0 : index
    %c0_1 = arith.constant 0 : index
    %c0_2 = arith.constant 0 : index
    %0 = vector.load %arg1[%c0, %c0_0, %c0_1, %c0_2] : memref<1x16x16x16xbf16, #tpu.memory_space<vmem>>, vector<1x16x16x16xbf16>
    %1 = vector.shape_cast %0 : vector<1x16x16x16xbf16> to vector<16x16x16xbf16>
    %cst = arith.constant 0.000000e+00 : bf16
    %2 = vector.broadcast %cst : bf16 to vector<16x1x16xbf16>
    %cst_3 = arith.constant 0.000000e+00 : bf16
    %3 = vector.broadcast %cst_3 : bf16 to vector<1x16x16xbf16>
    %4 = vector.extract_strided_slice %1 {offsets = [0, 1, 0], sizes = [16, 15, 16], strides = [1, 1, 1]} : vector<16x16x16xbf16> to vector<16x15x16xbf16>
    %5 = tpu.concatenate %4, %2 in 1 : vector<16x15x16xbf16>, vector<16x1x16xbf16> -> vector<16x16x16xbf16>
    %6 = vector.extract_strided_slice %1 {offsets = [1, 0, 0], sizes = [15, 16, 16], strides = [1, 1, 1]} : vector<16x16x16xbf16> to vector<15x16x16xbf16>
    %7 = tpu.concatenate %6, %3 in 0 : vector<15x16x16xbf16>, vector<1x16x16xbf16> -> vector<16x16x16xbf16>
    %8 = vector.extract_strided_slice %7 {offsets = [0, 1, 0], sizes = [16, 15, 16], strides = [1, 1, 1]} : vector<16x16x16xbf16> to vector<16x15x16xbf16>
    %9 = tpu.concatenate %8, %2 in 1 : vector<16x15x16xbf16>, vector<16x1x16xbf16> -> vector<16x16x16xbf16>
    %10 = vector.shape_cast %1 : vector<16x16x16xbf16> to vector<256x16xbf16>
    %c0_4 = arith.constant 0 : index
    %c0_5 = arith.constant 0 : index
    %c0_6 = arith.constant 0 : index
    %11 = vector.load %arg2[%c0_4, %c0_5, %c0_6] : memref<4x16x64xbf16, #tpu.memory_space<vmem>>, vector<1x16x64xbf16>
    %12 = vector.shape_cast %11 : vector<1x16x64xbf16> to vector<16x64xbf16>
    %cst_7 = arith.constant dense<0.000000e+00> : vector<256x64xf32>
    %13 = tpu.matmul %10, %12, %cst_7 {dimension_numbers = #tpu.dot_dimension_numbers<[1], [0], [0], [1], [0, 0, 1, 1], [], []>} : vector<256x16xbf16>, vector<16x64xbf16>, vector<256x64xf32> -> vector<256x64xf32>
    %14 = vector.shape_cast %5 : vector<16x16x16xbf16> to vector<256x16xbf16>
    %c1 = arith.constant 1 : index
    %c0_8 = arith.constant 0 : index
    %c0_9 = arith.constant 0 : index
    %15 = vector.load %arg2[%c1, %c0_8, %c0_9] : memref<4x16x64xbf16, #tpu.memory_space<vmem>>, vector<1x16x64xbf16>
    %16 = vector.shape_cast %15 : vector<1x16x64xbf16> to vector<16x64xbf16>
    %cst_10 = arith.constant dense<0.000000e+00> : vector<256x64xf32>
    %17 = tpu.matmul %14, %16, %cst_10 {dimension_numbers = #tpu.dot_dimension_numbers<[1], [0], [0], [1], [0, 0, 1, 1], [], []>} : vector<256x16xbf16>, vector<16x64xbf16>, vector<256x64xf32> -> vector<256x64xf32>
    %18 = arith.addf %13, %17 : vector<256x64xf32>
    %19 = vector.shape_cast %7 : vector<16x16x16xbf16> to vector<256x16xbf16>
    %c2 = arith.constant 2 : index
    %c0_11 = arith.constant 0 : index
    %c0_12 = arith.constant 0 : index
    %20 = vector.load %arg2[%c2, %c0_11, %c0_12] : memref<4x16x64xbf16, #tpu.memory_space<vmem>>, vector<1x16x64xbf16>
    %21 = vector.shape_cast %20 : vector<1x16x64xbf16> to vector<16x64xbf16>
    %cst_13 = arith.constant dense<0.000000e+00> : vector<256x64xf32>
    %22 = tpu.matmul %19, %21, %cst_13 {dimension_numbers = #tpu.dot_dimension_numbers<[1], [0], [0], [1], [0, 0, 1, 1], [], []>} : vector<256x16xbf16>, vector<16x64xbf16>, vector<256x64xf32> -> vector<256x64xf32>
    %23 = arith.addf %18, %22 : vector<256x64xf32>
    %24 = vector.shape_cast %9 : vector<16x16x16xbf16> to vector<256x16xbf16>
    %c3 = arith.constant 3 : index
    %c0_14 = arith.constant 0 : index
    %c0_15 = arith.constant 0 : index
    %25 = vector.load %arg2[%c3, %c0_14, %c0_15] : memref<4x16x64xbf16, #tpu.memory_space<vmem>>, vector<1x16x64xbf16>
    %26 = vector.shape_cast %25 : vector<1x16x64xbf16> to vector<16x64xbf16>
    %cst_16 = arith.constant dense<0.000000e+00> : vector<256x64xf32>
    %27 = tpu.matmul %24, %26, %cst_16 {dimension_numbers = #tpu.dot_dimension_numbers<[1], [0], [0], [1], [0, 0, 1, 1], [], []>} : vector<256x16xbf16>, vector<16x64xbf16>, vector<256x64xf32> -> vector<256x64xf32>
    %28 = arith.addf %23, %27 : vector<256x64xf32>
    %c0_17 = arith.constant 0 : index
    %c0_18 = arith.constant 0 : index
    %29 = vector.load %arg3[%c0_17, %c0_18] : memref<1x64xf32, #tpu.memory_space<vmem>>, vector<1x64xf32>
    %30 = vector.broadcast %29 : vector<1x64xf32> to vector<256x64xf32>
    %31 = arith.mulf %28, %30 : vector<256x64xf32>
    %c0_19 = arith.constant 0 : index
    %c0_20 = arith.constant 0 : index
    %32 = vector.load %arg4[%c0_19, %c0_20] : memref<1x64xf32, #tpu.memory_space<vmem>>, vector<1x64xf32>
    %33 = vector.broadcast %32 : vector<1x64xf32> to vector<256x64xf32>
    %34 = arith.addf %31, %33 : vector<256x64xf32>
    %cst_21 = arith.constant 0.000000e+00 : f32
    %35 = vector.broadcast %cst_21 : f32 to vector<256x64xf32>
    %36 = arith.cmpf ogt, %34, %35 : vector<256x64xf32>
    %cst_22 = arith.constant 0.000000e+00 : f32
    %37 = vector.broadcast %cst_22 : f32 to vector<256x64xf32>
    %38 = arith.minimumf %34, %37 : vector<256x64xf32>
    %39 = math.exp %38 : vector<256x64xf32>
    %cst_23 = arith.constant 1.000000e+00 : f32
    %40 = vector.broadcast %cst_23 : f32 to vector<256x64xf32>
    %41 = arith.subf %39, %40 : vector<256x64xf32>
    %42 = arith.select %36, %34, %41 : vector<256x64xi1>, vector<256x64xf32>
    %43 = arith.truncf %42 : vector<256x64xf32> to vector<256x64xbf16>
    %c0_24 = arith.constant 0 : index
    %c0_25 = arith.constant 0 : index
    %c0_26 = arith.constant 0 : index
    %44 = vector.load %arg5[%c0_24, %c0_25, %c0_26] : memref<1x256x64xbf16, #tpu.memory_space<vmem>>, vector<1x256x64xbf16>
    %45 = vector.shape_cast %44 : vector<1x256x64xbf16> to vector<256x64xbf16>
    %46 = vector.shape_cast %43 : vector<256x64xbf16> to vector<1x256x64xbf16>
    tpu.vector_store %arg5[%c0_24, %c0_25, %c0_26], %46 {strides = array<i32>} : memref<1x256x64xbf16, #tpu.memory_space<vmem>>, vector<1x256x64xbf16>,
    return
  }
  func.func @transform_0(%arg0: i32) -> (i32, i32, i32, i32) {
    %c0_i32 = arith.constant 0 : i32
    %c0_i32_0 = arith.constant 0 : i32
    %c0_i32_1 = arith.constant 0 : i32
    %c0_i32_2 = arith.constant 0 : i32
    return %arg0, %c0_i32, %c0_i32_0, %c0_i32_1 : i32, i32, i32, i32
  }
  func.func @transform_1(%arg0: i32) -> (i32, i32, i32) {
    %c0_i32 = arith.constant 0 : i32
    %c0_i32_0 = arith.constant 0 : i32
    %c0_i32_1 = arith.constant 0 : i32
    %c0_i32_2 = arith.constant 0 : i32
    return %c0_i32, %c0_i32_0, %c0_i32_1 : i32, i32, i32
  }
  func.func @transform_2(%arg0: i32) -> (i32, i32) {
    %c0_i32 = arith.constant 0 : i32
    %c0_i32_0 = arith.constant 0 : i32
    %c0_i32_1 = arith.constant 0 : i32
    return %c0_i32, %c0_i32_0 : i32, i32
  }
  func.func @transform_3(%arg0: i32) -> (i32, i32) {
    %c0_i32 = arith.constant 0 : i32
    %c0_i32_0 = arith.constant 0 : i32
    %c0_i32_1 = arith.constant 0 : i32
    return %c0_i32, %c0_i32_0 : i32, i32
  }
  func.func @transform_4(%arg0: i32) -> (i32, i32, i32) {
    %c0_i32 = arith.constant 0 : i32
    %c0_i32_0 = arith.constant 0 : i32
    %c0_i32_1 = arith.constant 0 : i32
    return %arg0, %c0_i32, %c0_i32_0 : i32, i32, i32
  }
}

module attributes {stable_mosaic.version = 11 : i64} {
  func.func @_matmul_ep_kernel(%arg0: i32, %arg1: memref<256x64xbf16, #tpu.memory_space<vmem>>, %arg2: memref<64x128xbf16, #tpu.memory_space<vmem>>, %arg3: memref<1x128xf32, #tpu.memory_space<vmem>>, %arg4: memref<1x128xf32, #tpu.memory_space<vmem>>, %arg5: memref<256x128xf32, #tpu.memory_space<vmem>>) attributes {dimension_semantics = [#tpu.dimension_semantics<parallel>], iteration_bounds = array<i64: 2>, scalar_prefetch = 0 : i64, scratch_operands = 0 : i64, tpu.core_type = #tpu.core_type<tc>, window_params = [{transform_indices = @transform_0, window_bounds = array<i64: 256, 64>}, {pipeline_mode = #tpu.pipeline_mode<synchronous>, transform_indices = @transform_1, window_bounds = array<i64: 64, 128>}, {pipeline_mode = #tpu.pipeline_mode<synchronous>, transform_indices = @transform_2, window_bounds = array<i64: 1, 128>}, {pipeline_mode = #tpu.pipeline_mode<synchronous>, transform_indices = @transform_3, window_bounds = array<i64: 1, 128>}, {transform_indices = @transform_4, window_bounds = array<i64: 256, 128>}]} {
    %c0 = arith.constant 0 : index
    %c0_0 = arith.constant 0 : index
    %0 = vector.load %arg1[%c0, %c0_0] : memref<256x64xbf16, #tpu.memory_space<vmem>>, vector<256x64xbf16>
    %c0_1 = arith.constant 0 : index
    %c0_2 = arith.constant 0 : index
    %1 = vector.load %arg2[%c0_1, %c0_2] : memref<64x128xbf16, #tpu.memory_space<vmem>>, vector<64x128xbf16>
    %cst = arith.constant dense<0.000000e+00> : vector<256x128xf32>
    %2 = tpu.matmul %0, %1, %cst {dimension_numbers = #tpu.dot_dimension_numbers<[1], [0], [0], [1], [0, 0, 1, 1], [], []>} : vector<256x64xbf16>, vector<64x128xbf16>, vector<256x128xf32> -> vector<256x128xf32>
    %c0_3 = arith.constant 0 : index
    %c0_4 = arith.constant 0 : index
    %3 = vector.load %arg3[%c0_3, %c0_4] : memref<1x128xf32, #tpu.memory_space<vmem>>, vector<1x128xf32>
    %4 = vector.broadcast %3 : vector<1x128xf32> to vector<256x128xf32>
    %5 = arith.mulf %2, %4 : vector<256x128xf32>
    %c0_5 = arith.constant 0 : index
    %c0_6 = arith.constant 0 : index
    %6 = vector.load %arg4[%c0_5, %c0_6] : memref<1x128xf32, #tpu.memory_space<vmem>>, vector<1x128xf32>
    %7 = vector.broadcast %6 : vector<1x128xf32> to vector<256x128xf32>
    %8 = arith.addf %5, %7 : vector<256x128xf32>
    %cst_7 = arith.constant 0.000000e+00 : f32
    %9 = vector.broadcast %cst_7 : f32 to vector<256x128xf32>
    %10 = arith.cmpf ogt, %8, %9 : vector<256x128xf32>
    %cst_8 = arith.constant 0.000000e+00 : f32
    %11 = vector.broadcast %cst_8 : f32 to vector<256x128xf32>
    %12 = arith.minimumf %8, %11 : vector<256x128xf32>
    %13 = math.exp %12 : vector<256x128xf32>
    %cst_9 = arith.constant 1.000000e+00 : f32
    %14 = vector.broadcast %cst_9 : f32 to vector<256x128xf32>
    %15 = arith.subf %13, %14 : vector<256x128xf32>
    %16 = arith.select %10, %8, %15 : vector<256x128xi1>, vector<256x128xf32>
    %c0_10 = arith.constant 0 : index
    %c0_11 = arith.constant 0 : index
    %17 = vector.load %arg5[%c0_10, %c0_11] : memref<256x128xf32, #tpu.memory_space<vmem>>, vector<256x128xf32>
    tpu.vector_store %arg5[%c0_10, %c0_11], %16 {strides = array<i32>} : memref<256x128xf32, #tpu.memory_space<vmem>>, vector<256x128xf32>,
    return
  }
  func.func @transform_0(%arg0: i32) -> (i32, i32) {
    %c0_i32 = arith.constant 0 : i32
    %c0_i32_0 = arith.constant 0 : i32
    return %arg0, %c0_i32 : i32, i32
  }
  func.func @transform_1(%arg0: i32) -> (i32, i32) {
    %c0_i32 = arith.constant 0 : i32
    %c0_i32_0 = arith.constant 0 : i32
    %c0_i32_1 = arith.constant 0 : i32
    return %c0_i32, %c0_i32_0 : i32, i32
  }
  func.func @transform_2(%arg0: i32) -> (i32, i32) {
    %c0_i32 = arith.constant 0 : i32
    %c0_i32_0 = arith.constant 0 : i32
    %c0_i32_1 = arith.constant 0 : i32
    return %c0_i32, %c0_i32_0 : i32, i32
  }
  func.func @transform_3(%arg0: i32) -> (i32, i32) {
    %c0_i32 = arith.constant 0 : i32
    %c0_i32_0 = arith.constant 0 : i32
    %c0_i32_1 = arith.constant 0 : i32
    return %c0_i32, %c0_i32_0 : i32, i32
  }
  func.func @transform_4(%arg0: i32) -> (i32, i32) {
    %c0_i32 = arith.constant 0 : i32
    %c0_i32_0 = arith.constant 0 : i32
    return %arg0, %c0_i32 : i32, i32
  }
}

module attributes {stable_mosaic.version = 11 : i64} {
  func.func @_matmul_ep_kernel(%arg0: i32, %arg1: memref<256x64xf32, #tpu.memory_space<vmem>>, %arg2: memref<64x16xbf16, #tpu.memory_space<vmem>>, %arg3: memref<1x16xf32, #tpu.memory_space<vmem>>, %arg4: memref<1x16xf32, #tpu.memory_space<vmem>>, %arg5: memref<256x16xbf16, #tpu.memory_space<vmem>>) attributes {dimension_semantics = [#tpu.dimension_semantics<parallel>], iteration_bounds = array<i64: 2>, scalar_prefetch = 0 : i64, scratch_operands = 0 : i64, tpu.core_type = #tpu.core_type<tc>, window_params = [{transform_indices = @transform_0, window_bounds = array<i64: 256, 64>}, {pipeline_mode = #tpu.pipeline_mode<synchronous>, transform_indices = @transform_1, window_bounds = array<i64: 64, 16>}, {pipeline_mode = #tpu.pipeline_mode<synchronous>, transform_indices = @transform_2, window_bounds = array<i64: 1, 16>}, {pipeline_mode = #tpu.pipeline_mode<synchronous>, transform_indices = @transform_3, window_bounds = array<i64: 1, 16>}, {transform_indices = @transform_4, window_bounds = array<i64: 256, 16>}]} {
    %c0 = arith.constant 0 : index
    %c0_0 = arith.constant 0 : index
    %0 = vector.load %arg1[%c0, %c0_0] : memref<256x64xf32, #tpu.memory_space<vmem>>, vector<256x64xf32>
    %1 = arith.truncf %0 : vector<256x64xf32> to vector<256x64xbf16>
    %c0_1 = arith.constant 0 : index
    %c0_2 = arith.constant 0 : index
    %2 = vector.load %arg2[%c0_1, %c0_2] : memref<64x16xbf16, #tpu.memory_space<vmem>>, vector<64x16xbf16>
    %cst = arith.constant dense<0.000000e+00> : vector<256x16xf32>
    %3 = tpu.matmul %1, %2, %cst {dimension_numbers = #tpu.dot_dimension_numbers<[1], [0], [0], [1], [0, 0, 1, 1], [], []>} : vector<256x64xbf16>, vector<64x16xbf16>, vector<256x16xf32> -> vector<256x16xf32>
    %c0_3 = arith.constant 0 : index
    %c0_4 = arith.constant 0 : index
    %4 = vector.load %arg3[%c0_3, %c0_4] : memref<1x16xf32, #tpu.memory_space<vmem>>, vector<1x16xf32>
    %5 = vector.broadcast %4 : vector<1x16xf32> to vector<256x16xf32>
    %6 = arith.mulf %3, %5 : vector<256x16xf32>
    %c0_5 = arith.constant 0 : index
    %c0_6 = arith.constant 0 : index
    %7 = vector.load %arg4[%c0_5, %c0_6] : memref<1x16xf32, #tpu.memory_space<vmem>>, vector<1x16xf32>
    %8 = vector.broadcast %7 : vector<1x16xf32> to vector<256x16xf32>
    %9 = arith.addf %6, %8 : vector<256x16xf32>
    %cst_7 = arith.constant 0.000000e+00 : f32
    %10 = vector.broadcast %cst_7 : f32 to vector<256x16xf32>
    %11 = arith.cmpf ogt, %9, %10 : vector<256x16xf32>
    %cst_8 = arith.constant 0.000000e+00 : f32
    %12 = vector.broadcast %cst_8 : f32 to vector<256x16xf32>
    %13 = arith.minimumf %9, %12 : vector<256x16xf32>
    %14 = math.exp %13 : vector<256x16xf32>
    %cst_9 = arith.constant 1.000000e+00 : f32
    %15 = vector.broadcast %cst_9 : f32 to vector<256x16xf32>
    %16 = arith.subf %14, %15 : vector<256x16xf32>
    %17 = arith.select %11, %9, %16 : vector<256x16xi1>, vector<256x16xf32>
    %18 = arith.truncf %17 : vector<256x16xf32> to vector<256x16xbf16>
    %c0_10 = arith.constant 0 : index
    %c0_11 = arith.constant 0 : index
    %19 = vector.load %arg5[%c0_10, %c0_11] : memref<256x16xbf16, #tpu.memory_space<vmem>>, vector<256x16xbf16>
    tpu.vector_store %arg5[%c0_10, %c0_11], %18 {strides = array<i32>} : memref<256x16xbf16, #tpu.memory_space<vmem>>, vector<256x16xbf16>,
    return
  }
  func.func @transform_0(%arg0: i32) -> (i32, i32) {
    %c0_i32 = arith.constant 0 : i32
    %c0_i32_0 = arith.constant 0 : i32
    return %arg0, %c0_i32 : i32, i32
  }
  func.func @transform_1(%arg0: i32) -> (i32, i32) {
    %c0_i32 = arith.constant 0 : i32
    %c0_i32_0 = arith.constant 0 : i32
    %c0_i32_1 = arith.constant 0 : i32
    return %c0_i32, %c0_i32_0 : i32, i32
  }
  func.func @transform_2(%arg0: i32) -> (i32, i32) {
    %c0_i32 = arith.constant 0 : i32
    %c0_i32_0 = arith.constant 0 : i32
    %c0_i32_1 = arith.constant 0 : i32
    return %c0_i32, %c0_i32_0 : i32, i32
  }
  func.func @transform_3(%arg0: i32) -> (i32, i32) {
    %c0_i32 = arith.constant 0 : i32
    %c0_i32_0 = arith.constant 0 : i32
    %c0_i32_1 = arith.constant 0 : i32
    return %c0_i32, %c0_i32_0 : i32, i32
  }
  func.func @transform_4(%arg0: i32) -> (i32, i32) {
    %c0_i32 = arith.constant 0 : i32
    %c0_i32_0 = arith.constant 0 : i32
    return %arg0, %c0_i32 : i32, i32
  }
}

</mosaic_0001>

<bundles_post_ra>
// kernel: tile.28
= control target key start
LH: loop header
LB: loop body
LE: loop exit
PB: predicated region body
PF: predicated region fallthrough
CT: control target
= control target key end

     0   :  { %s22_s0 = inlined_call_operand.vmem [shape: f32[16], index: 0, kind: input, shape index: {}]   ;;  %s23_s1 = inlined_call_operand.vmem [shape: f32[4,16], index: 1, kind: output, shape index: {}]  }
   0x1   :  { %v4_v0 = vld [vmem:[%s22_s0] ss:$0 sm:$0xff] }
   0x2   :  { %5 = vst [vmem:[%s23_s1] sm:$0xf] %v4_v0 }

// kernel: tile.37
= control target key start
LH: loop header
LB: loop body
LE: loop exit
PB: predicated region body
PF: predicated region fallthrough
CT: control target
= control target key end

     0   :  { %s22_s0 = inlined_call_operand.vmem [shape: f32[32], index: 0, kind: input, shape index: {}]   ;;  %s23_s1 = inlined_call_operand.vmem [shape: f32[4,32], index: 1, kind: output, shape index: {}]  }
   0x1   :  { %v4_v0 = vld [vmem:[%s22_s0] ss:$0 sm:$0xff] }
   0x2   :  { %5 = vst [vmem:[%s23_s1] sm:$0xf] %v4_v0 }

// kernel: tile.39
= control target key start
LH: loop header
LB: loop body
LE: loop exit
PB: predicated region body
PF: predicated region fallthrough
CT: control target
= control target key end

     0   :  { %s37_s8 = smov 32   ;;  %s38_s9 = smov 64   ;;  %vm7_vm0 = vcmask 261120   ;;  %vm13_vm1 = vcmask 1048320   ;;  %vm19_vm2 = vcmask 785920   ;;  %vm25_vm3 = vcmask 523520   ;;  %s55_s0 = inlined_call_operand.vmem [shape: f32[4,32], index: 0, kind: input, shape index: {}]   ;;  %s56_s1 = inlined_call_operand.vmem [shape: f32[1,128], index: 1, kind: output, shape index: {}]  }
   0x1   :  { %v4_v0 = vld [vmem:[%s55_s0] sm:$0xf]  ;;  %s36_s0 = smov 96  }
   0x2   :  { %5 = vst [vmem:[#allocation1] sm:$0xf] %v4_v0 }
   0x9   :  { %v10_v1 = vld [vmem:[#allocation1 + $0x3] sm:$0x1]   ;;  %v22_v2 = vld [vmem:[#allocation1 + $0x1] sm:$0x1]   ;;  %v16_v3 = vld [vmem:[#allocation1 + $0x2] sm:$0x1]  }
   0xa   :  { %11 = vrot.lane.b32.xlu0 %v10_v1, %s36_s0  ;;  %23 = vrot.lane.b32.xlu1 %v22_v2, %s37_s8  ;;  %v6_v4 = vld [vmem:[#allocation1] sm:$0x1]  }
   0xb   :  { %8 = vst.msk [vmem:[#allocation0] sm:$0x1] %vm7_vm0, %v6_v4  }
  0x12   :  { %17 = vrot.lane.b32.xlu0 %v16_v3, %s38_s9 }
  0x7c   :  { %v12_v5 = vpop.permute.xlu0 %11   ;;  %v24_v6 = vpop.permute.xlu1 %23  }
  0x7d   :  { %14 = vst.msk [vmem:[#allocation0] sm:$0x1] %vm13_vm1, %v12_v5  }
  0x84   :  { %v18_v7 = vpop.permute.xlu0 %17  }
  0x85   :  { %20 = vst.msk [vmem:[#allocation0] sm:$0x1] %vm19_vm2, %v18_v7  }
  0x86   :  { %26 = vst.msk [vmem:[#allocation0] sm:$0x1] %vm25_vm3, %v24_v6  }
  0x8d   :  { %v29_v8 = vld [vmem:[#allocation0] sm:$0x1] }
  0x8e   :  { %32 = vst [vmem:[%s56_s1] sm:$0x1] %v29_v8 }

// kernel: tile.29
= control target key start
LH: loop header
LB: loop body
LE: loop exit
PB: predicated region body
PF: predicated region fallthrough
CT: control target
= control target key end

     0   :  { %s37_s8 = smov 16   ;;  %s38_s9 = smov 32   ;;  %vm7_vm0 = vcmask 130048   ;;  %vm13_vm1 = vcmask 523648   ;;  %vm19_vm2 = vcmask 392448   ;;  %vm25_vm3 = vcmask 261248   ;;  %s55_s0 = inlined_call_operand.vmem [shape: f32[4,16], index: 0, kind: input, shape index: {}]   ;;  %s56_s1 = inlined_call_operand.vmem [shape: f32[1,64], index: 1, kind: output, shape index: {}]  }
   0x1   :  { %v4_v0 = vld [vmem:[%s55_s0] sm:$0xf]  ;;  %s36_s0 = smov 48  }
   0x2   :  { %5 = vst [vmem:[#allocation1] sm:$0xf] %v4_v0 }
   0x9   :  { %v10_v1 = vld [vmem:[#allocation1 + $0x3] sm:$0x1]   ;;  %v22_v2 = vld [vmem:[#allocation1 + $0x1] sm:$0x1]   ;;  %v16_v3 = vld [vmem:[#allocation1 + $0x2] sm:$0x1]  }
   0xa   :  { %11 = vrot.lane.b32.xlu0 %v10_v1, %s36_s0  ;;  %23 = vrot.lane.b32.xlu1 %v22_v2, %s37_s8  ;;  %v6_v4 = vld [vmem:[#allocation1] sm:$0x1]  }
   0xb   :  { %8 = vst.msk [vmem:[#allocation0] sm:$0x1] %vm7_vm0, %v6_v4  }
  0x12   :  { %17 = vrot.lane.b32.xlu0 %v16_v3, %s38_s9 }
  0x7c   :  { %v12_v5 = vpop.permute.xlu0 %11   ;;  %v24_v6 = vpop.permute.xlu1 %23  }
  0x7d   :  { %14 = vst.msk [vmem:[#allocation0] sm:$0x1] %vm13_vm1, %v12_v5  }
  0x84   :  { %v18_v7 = vpop.permute.xlu0 %17  }
  0x85   :  { %20 = vst.msk [vmem:[#allocation0] sm:$0x1] %vm19_vm2, %v18_v7  }
  0x86   :  { %26 = vst.msk [vmem:[#allocation0] sm:$0x1] %vm25_vm3, %v24_v6  }
  0x8d   :  { %v29_v8 = vld [vmem:[#allocation0] sm:$0x1] }
  0x8e   :  { %32 = vst [vmem:[%s56_s1] sm:$0x1] %v29_v8 }

// kernel: decoder_block_forward.3
= control target key start
LH: loop header
LB: loop body
LE: loop exit
PB: predicated region body
PF: predicated region fallthrough
CT: control target
= control target key end

     0   :  { %s1003_s15 = smov 0   ;;  %s1389_s0 = inlined_call_operand.vmem [shape: f32[512,64], index: 0, kind: input, shape index: {}]   ;;  %s1390_s1 = inlined_call_operand.vmem [shape: bf16[64,16], index: 1, kind: input, shape index: {}]   ;;  %s1391_s2 = inlined_call_operand.vmem [shape: f32[1,16], index: 2, kind: input, shape index: {}]   ;;  %s1392_s3 = inlined_call_operand.vmem [shape: f32[1,16], index: 3, kind: input, shape index: {}]   ;;  %s1393_s4 = inlined_call_operand.vmem [shape: bf16[512,16], index: 4, kind: output, shape index: {}]  }
   0x1 LB: > { %s805_s16 = sadd.s32 4294967295, %s976_s15   ;;  %p809_p0 = scmp.ge.s32.totalorder %s976_s15, 1  ;;  %s976_s15 = sphi %s1003_s15, %s14_s15  }
   0x2   : > { %p163_p1 = scmp.lt.s32.totalorder %s976_s15, 3 }
   0x4   : > { %p164_p2 = pnand %p809_p0, %p163_p1 }
   0x5   : > { %s810_s19 = sshll.u32 (!%p164_p2), %s805_s16, 5 }
   0x6   : > { %167 = sbr.rel (%p164_p2) target bundleno = 244 (0xf4), region = 36  ;;  %p190_p3 = scmp.lt.s32.totalorder (!%p164_p2), %s810_s19, 63 }
   0xb   : > { %v883_v0 = vld [vmem:[%s1390_s1 + $0x18] sm:$0xff]  ;;  %v882_v1 = vld [vmem:[%s1390_s1 + $0x10] sm:$0xff]  ;;  %s1395_s19 = smov (!%p190_p3, %s810_s19), 63  ;;  %v881_v2 = vld [vmem:[%s1390_s1 + $0x8] sm:$0xff]  ;;  %vm282_vm0 = vcmask 523264   ;;  %vm716_vm1 = vcmask 125952  }
   0xc   : > { %335 = vmatpush.bf16.msra.mxu0 %v883_v0  ;;  %884 = vmatpush.bf16.msra.mxu1 %v883_v0  ;;  %s811_s22 = sshll.u32 %s1395_s19, 3  ;;  %v880_v3 = vld [vmem:[%s1390_s1] sm:$0xff]  ;;  %s813_s8 = sshll.u32 %s1395_s19, 2 }
   0xd   : > { %885 = vmatpush.bf16.msra.mxu2 %v883_v0  ;;  %886 = vmatpush.bf16.msra.mxu3 %v883_v0  ;;  %s1026_s27 = scalar_lea.vmem %s1389_s0, %s811_s22  ;;  %v1082_v52 = vld [vmem:[%s1391_s2] ss:$0 sm:$0xff]  ;;  %s1121_s11 = scalar_lea.vmem %s1393_s4, %s813_s8 }
   0xe   : > { %v202_v4 = vld [vmem:[%s1026_s27] sm:$0xff]  ;;  %v203_v5 = vld [vmem:[%s1026_s27 + $0x8] sm:$0xff]  ;;  %v204_v16 = vld [vmem:[%s1026_s27 + $0x10] sm:$0xff] }
   0xf   : > { %v210_v6 = vld [vmem:[%s1026_s27 + $0x40] sm:$0xff]  ;;  %v211_v7 = vld [vmem:[%s1026_s27 + $0x48] sm:$0xff]  ;;  %v234_v12 = vpack.c.bf16 %v203_v5, %v202_v4  ;;  %v205_v17 = vld [vmem:[%s1026_s27 + $0x18] sm:$0xff] }
  0x10   : > { %336 = vmatpush.bf16.msra.mxu0 %v882_v1  ;;  %887 = vmatpush.bf16.msra.mxu1 %v882_v1  ;;  %v218_v8 = vld [vmem:[%s1026_s27 + $0x80] sm:$0xff]  ;;  %v219_v9 = vld [vmem:[%s1026_s27 + $0x88] sm:$0xff]  ;;  %v238_v13 = vpack.c.bf16 %v211_v7, %v210_v6  ;;  %v212_v18 = vld [vmem:[%s1026_s27 + $0x50] sm:$0xff]  ;;  %v235_v24 = vpack.c.bf16 %v205_v17, %v204_v16 }
  0x11   : > { %888 = vmatpush.bf16.msra.mxu2 %v882_v1  ;;  %889 = vmatpush.bf16.msra.mxu3 %v882_v1  ;;  %v226_v10 = vld [vmem:[%s1026_s27 + $0xc0] sm:$0xff]  ;;  %v227_v11 = vld [vmem:[%s1026_s27 + $0xc8] sm:$0xff]  ;;  %v242_v14 = vpack.c.bf16 %v219_v9, %v218_v8  ;;  %v213_v19 = vld [vmem:[%s1026_s27 + $0x58] sm:$0xff] }
  0x12   : > { %v246_v15 = vpack.c.bf16 %v227_v11, %v226_v10  ;;  %v220_v20 = vld [vmem:[%s1026_s27 + $0x90] sm:$0xff]  ;;  %v221_v21 = vld [vmem:[%s1026_s27 + $0x98] sm:$0xff]  ;;  %v239_v25 = vpack.c.bf16 %v213_v19, %v212_v18  ;;  %v206_v28 = vld [vmem:[%s1026_s27 + $0x20] sm:$0xff] }
  0x13   : > { %v228_v22 = vld [vmem:[%s1026_s27 + $0xd0] sm:$0xff]  ;;  %v229_v23 = vld [vmem:[%s1026_s27 + $0xd8] sm:$0xff]  ;;  %v243_v26 = vpack.c.bf16 %v221_v21, %v220_v20  ;;  %v207_v29 = vld [vmem:[%s1026_s27 + $0x28] sm:$0xff] }
  0x14   : > { %337 = vmatpush.bf16.msra.mxu0 %v881_v2  ;;  %890 = vmatpush.bf16.msra.mxu1 %v881_v2  ;;  %v247_v27 = vpack.c.bf16 %v229_v23, %v228_v22  ;;  %v214_v30 = vld [vmem:[%s1026_s27 + $0x60] sm:$0xff]  ;;  %v215_v31 = vld [vmem:[%s1026_s27 + $0x68] sm:$0xff]  ;;  %v236_v36 = vpack.c.bf16 %v207_v29, %v206_v28  ;;  %v208_v40 = vld [vmem:[%s1026_s27 + $0x30] sm:$0xff] }
  0x15   : > { %891 = vmatpush.bf16.msra.mxu2 %v881_v2  ;;  %892 = vmatpush.bf16.msra.mxu3 %v881_v2  ;;  %v222_v32 = vld [vmem:[%s1026_s27 + $0xa0] sm:$0xff]  ;;  %v223_v33 = vld [vmem:[%s1026_s27 + $0xa8] sm:$0xff]  ;;  %v240_v37 = vpack.c.bf16 %v215_v31, %v214_v30  ;;  %v209_v41 = vld [vmem:[%s1026_s27 + $0x38] sm:$0xff] }
  0x16   : > { %v230_v34 = vld [vmem:[%s1026_s27 + $0xe0] sm:$0xff]  ;;  %v231_v35 = vld [vmem:[%s1026_s27 + $0xe8] sm:$0xff]  ;;  %v244_v38 = vpack.c.bf16 %v223_v33, %v222_v32  ;;  %v216_v42 = vld [vmem:[%s1026_s27 + $0x70] sm:$0xff]  ;;  %v237_v48 = vpack.c.bf16 %v209_v41, %v208_v40 }
  0x17   : > { %v248_v39 = vpack.c.bf16 %v231_v35, %v230_v34  ;;  %v217_v43 = vld [vmem:[%s1026_s27 + $0x78] sm:$0xff]  ;;  %v224_v44 = vld [vmem:[%s1026_s27 + $0xb0] sm:$0xff]  ;;  %v1087_v53 = vld [vmem:[%s1392_s3] ss:$0 sm:$0xff] }
  0x18   : > { %338 = vmatpush.bf16.msra.mxu0 %v880_v3  ;;  %893 = vmatpush.bf16.msra.mxu1 %v880_v3  ;;  %v225_v45 = vld [vmem:[%s1026_s27 + $0xb8] sm:$0xff]  ;;  %v232_v46 = vld [vmem:[%s1026_s27 + $0xf0] sm:$0xff]  ;;  %v241_v49 = vpack.c.bf16 %v217_v43, %v216_v42 }
  0x19   : > { %894 = vmatpush.bf16.msra.mxu2 %v880_v3  ;;  %895 = vmatpush.bf16.msra.mxu3 %v880_v3  ;;  %v233_v47 = vld [vmem:[%s1026_s27 + $0xf8] sm:$0xff]  ;;  %v245_v50 = vpack.c.bf16 %v225_v45, %v224_v44 }
  0x1a   : > { %v249_v51 = vpack.c.bf16 %v233_v47, %v232_v46 }
  0x1b   : > { %830 = vmatmul.msk.bf16.vlgmr.msra.gmra.mxu0 %vm282_vm0, %v234_v12  ;;  %834 = vmatmul.msk.bf16.vlgmr.msra.gmra.mxu1 %vm282_vm0, %v238_v13 }
  0x1c   : > { %838 = vmatmul.msk.bf16.vlgmr.msra.gmra.mxu2 %vm282_vm0, %v242_v14  ;;  %842 = vmatmul.msk.bf16.vlgmr.msra.gmra.mxu3 %vm282_vm0, %v246_v15 }
  0x2b   : > { %831 = vmatmul.msk.bf16.gmra.mxu0 %vm282_vm0, %v235_v24  ;;  %835 = vmatmul.msk.bf16.gmra.mxu1 %vm282_vm0, %v239_v25 }
  0x2c   : > { %839 = vmatmul.msk.bf16.gmra.mxu2 %vm282_vm0, %v243_v26  ;;  %843 = vmatmul.msk.bf16.gmra.mxu3 %vm282_vm0, %v247_v27 }
  0x3b   : > { %832 = vmatmul.msk.bf16.gmra.mxu0 %vm282_vm0, %v236_v36  ;;  %836 = vmatmul.msk.bf16.gmra.mxu1 %vm282_vm0, %v240_v37 }
  0x3c   : > { %840 = vmatmul.msk.bf16.gmra.mxu2 %vm282_vm0, %v244_v38  ;;  %844 = vmatmul.msk.bf16.gmra.mxu3 %vm282_vm0, %v248_v39 }
  0x4b   : > { %833 = vmatmul.msk.bf16.gmra.mxu0 %vm282_vm0, %v237_v48  ;;  %837 = vmatmul.msk.bf16.gmra.mxu1 %vm282_vm0, %v241_v49 }
  0x4c   : > { %841 = vmatmul.msk.bf16.gmra.mxu2 %vm282_vm0, %v245_v50  ;;  %845 = vmatmul.msk.bf16.gmra.mxu3 %vm282_vm0, %v249_v51 }
  0x98   : > { %v340_v54 = vpop.f32.mrf.mxu0  ;;  %v360_v55 = vpop.f32.mrf.mxu1 }
  0x99   : > { %v424_v56 = vmul.f32 %v1082_v52, %v340_v54  ;;  %v432_v57 = vmul.f32 %v1082_v52, %v360_v55 }
  0x9b   : > { %v460_v58 = vadd.f32 %v1087_v53, %v424_v56  ;;  %v468_v59 = vadd.f32 %v1087_v53, %v432_v57 }
  0x9d   : > { %v524_v60 = vmin.f32 %v460_v58, 0.0  ;;  %v532_v61 = vmin.f32 %v468_v59, 0.0  ;;  %vm492_vm2 = vcmp.gt.f32.partialorder %v460_v58, 0.0  ;;  %vm500_vm3 = vcmp.gt.f32.partialorder %v468_v59, 0.0 }
  0x9f   : > { %v556_v62 = vmul.f32 1.442695, %v524_v60  ;;  %v572_v63 = vmul.f32 1.442695, %v532_v61  ;;  %v380_v0 = vpop.f32.mrf.mxu2  ;;  %v400_v1 = vpop.f32.mrf.mxu3 }
  0xa0   : > { %v440_v2 = vmul.f32 %v1082_v52, %v380_v0  ;;  %v448_v3 = vmul.f32 %v1082_v52, %v400_v1  ;;  %v342_v4 = vpop.f32.mrf.mxu0  ;;  %v362_v5 = vpop.f32.mrf.mxu1 }
  0xa1   : > { %906 = vpow2.f32 %v556_v62  ;;  %v425_v6 = vmul.f32 %v1082_v52, %v342_v4  ;;  %v433_v7 = vmul.f32 %v1082_v52, %v362_v5 }
  0xa2   : > { %908 = vpow2.f32 %v572_v63  ;;  %v1098_v8 = vadd.f32 %v1087_v53, %v440_v2  ;;  %v1101_v9 = vadd.f32 %v1087_v53, %v448_v3 }
  0xa3   : > { %v1104_v10 = vadd.f32 %v1087_v53, %v425_v6  ;;  %v1107_v11 = vadd.f32 %v1087_v53, %v433_v7 }
  0xa4   : > { %v540_v12 = vmin.f32 %v1098_v8, 0.0  ;;  %v548_v13 = vmin.f32 %v1101_v9, 0.0  ;;  %vm508_vm4 = vcmp.gt.f32.partialorder %v1098_v8, 0.0  ;;  %vm516_vm5 = vcmp.gt.f32.partialorder %v1101_v9, 0.0 }
  0xa5   : > { %v525_v14 = vmin.f32 %v1104_v10, 0.0  ;;  %v533_v15 = vmin.f32 %v1107_v11, 0.0  ;;  %vm493_vm6 = vcmp.gt.f32.partialorder %v1104_v10, 0.0  ;;  %vm501_vm7 = vcmp.gt.f32.partialorder %v1107_v11, 0.0 }
  0xa6   : > { %v588_v16 = vmul.f32 1.442695, %v540_v12  ;;  %v604_v17 = vmul.f32 1.442695, %v548_v13 }
  0xa7   : > { %v907_v18 = vpop.eup %906  ;;  %v558_v19 = vmul.f32 1.442695, %v525_v14  ;;  %v574_v20 = vmul.f32 1.442695, %v533_v15  ;;  %v382_v21 = vpop.f32.mrf.mxu2 }
  0xa8   : > { %v402_v22 = vpop.f32.mrf.mxu3  ;;  %v909_v23 = vpop.eup %908  ;;  %v846_v24 = vadd.f32 -1.0, %v907_v18  ;;  %910 = vpow2.f32 %v588_v16  ;;  %v441_v25 = vmul.f32 %v1082_v52, %v382_v21 }
  0xa9   : > { %v449_v26 = vmul.f32 %v1082_v52, %v402_v22  ;;  %v345_v27 = vpop.f32.mrf.mxu0  ;;  %v365_v28 = vpop.f32.mrf.mxu1  ;;  %v854_v29 = vadd.f32 -1.0, %v909_v23  ;;  %912 = vpow2.f32 %v604_v17 }
  0xaa   : > { %v426_v30 = vmul.f32 %v1082_v52, %v345_v27  ;;  %v434_v31 = vmul.f32 %v1082_v52, %v365_v28  ;;  %v652_v32 = vsel %vm492_vm2, %v460_v58, %v846_v24  ;;  %914 = vpow2.f32 %v558_v19 }
  0xab   : > { %v1125_v33 = vadd.f32 %v1087_v53, %v441_v25  ;;  %v1128_v34 = vadd.f32 %v1087_v53, %v449_v26  ;;  %v684_v35 = vpack.c.bf16 %v652_v32, %v652_v32  ;;  %v660_v36 = vsel %vm500_vm3, %v468_v59, %v854_v29 }
  0xac   : > { %916 = vpow2.f32 %v574_v20  ;;  %v1132_v37 = vadd.f32 %v1087_v53, %v426_v30  ;;  %v692_v38 = vpack.c.bf16 %v660_v36, %v660_v36  ;;  %v1141_v42 = vadd.f32 %v1087_v53, %v434_v31 }
  0xad   : > { %v541_v39 = vmin.f32 %v1125_v33, 0.0  ;;  %717 = vst.msk [vmem:[%s1121_s11] sm:$0xf] %vm716_vm1, %v684_v35  ;;  %v549_v40 = vmin.f32 %v1128_v34, 0.0  ;;  %vm509_vm8 = vcmp.gt.f32.partialorder %v1125_v33, 0.0  ;;  %vm517_vm9 = vcmp.gt.f32.partialorder %v1128_v34, 0.0 }
  0xae   : > { %v526_v41 = vmin.f32 %v1132_v37, 0.0  ;;  %v911_v43 = vpop.eup %910  ;;  %725 = vst.msk [vmem:[%s1121_s11 + $0x20] sm:$0xf] %vm716_vm1, %v692_v38  ;;  %v534_v55 = vmin.f32 %v1141_v42, 0.0  ;;  %vm494_vm10 = vcmp.gt.f32.partialorder %v1132_v37, 0.0  ;;  %vm502_vm11 = vcmp.gt.f32.partialorder %v1141_v42, 0.0 }
  0xaf   : > { %v590_v44 = vmul.f32 1.442695, %v541_v39  ;;  %v913_v45 = vpop.eup %912  ;;  %v862_v46 = vadd.f32 -1.0, %v911_v43  ;;  %v606_v47 = vmul.f32 1.442695, %v549_v40  ;;  %v385_v49 = vpop.f32.mrf.mxu2 }
  0xb0   : > { %v560_v48 = vmul.f32 1.442695, %v526_v41  ;;  %v405_v50 = vpop.f32.mrf.mxu3  ;;  %v915_v51 = vpop.eup %914  ;;  %v870_v54 = vadd.f32 -1.0, %v913_v45  ;;  %v442_v56 = vmul.f32 %v1082_v52, %v385_v49  ;;  %v576_v4 = vmul.f32 1.442695, %v534_v55 }
  0xb1   : > { %918 = vpow2.f32 %v590_v44  ;;  %v347_v57 = vpop.f32.mrf.mxu0  ;;  %v367_v58 = vpop.f32.mrf.mxu1  ;;  %v668_v60 = vsel %vm508_vm4, %v1098_v8, %v862_v46  ;;  %v847_v61 = vadd.f32 -1.0, %v915_v51  ;;  %v450_v62 = vmul.f32 %v1082_v52, %v405_v50 }
  0xb2   : > { %v917_v59 = vpop.eup %916  ;;  %920 = vpow2.f32 %v606_v47  ;;  %v700_v63 = vpack.c.bf16 %v668_v60, %v668_v60  ;;  %v676_v0 = vsel %vm516_vm5, %v1101_v9, %v870_v54  ;;  %v1161_v5 = vadd.f32 %v1087_v53, %v442_v56 }
  0xb3   : > { %v855_v1 = vadd.f32 -1.0, %v917_v59  ;;  %922 = vpow2.f32 %v560_v48  ;;  %v708_v2 = vpack.c.bf16 %v676_v0, %v676_v0  ;;  %v653_v3 = vsel %vm493_vm6, %v1104_v10, %v847_v61 }
  0xb4   : > { %733 = vst.msk [vmem:[%s1121_s11 + $0x40] sm:$0xf] %vm716_vm1, %v700_v63  ;;  %v685_v6 = vpack.c.bf16 %v653_v3, %v653_v3  ;;  %v1169_v8 = vadd.f32 %v1087_v53, %v450_v62  ;;  %v427_v9 = vmul.f32 %v1082_v52, %v347_v57  ;;  %924 = vpow2.f32 %v576_v4 }
  0xb5   : > { %v661_v7 = vsel %vm501_vm7, %v1107_v11, %v855_v1  ;;  %741 = vst.msk [vmem:[%s1121_s11 + $0x60] sm:$0xf] %vm716_vm1, %v708_v2  ;;  %v542_v12 = vmin.f32 %v1161_v5, 0.0  ;;  %v435_v15 = vmul.f32 %v1082_v52, %v367_v58  ;;  %vm510_vm12 = vcmp.gt.f32.partialorder %v1161_v5, 0.0 }
  0xb6   : > { %v693_v10 = vpack.c.bf16 %v661_v7, %v661_v7  ;;  %718 = vst.msk [vmem:[%s1121_s11 + $0x4] sm:$0xf] %vm716_vm1, %v685_v6  ;;  %v550_v14 = vmin.f32 %v1169_v8, 0.0  ;;  %v1180_v11 = vadd.f32 %v1087_v53, %v427_v9  ;;  %vm518_vm13 = vcmp.gt.f32.partialorder %v1169_v8, 0.0 }
  0xb7   : > { %v919_v13 = vpop.eup %918  ;;  %v592_v18 = vmul.f32 1.442695, %v542_v12  ;;  %v387_v19 = vpop.f32.mrf.mxu2  ;;  %v1192_v28 = vadd.f32 %v1087_v53, %v435_v15 }
  0xb8   : > { %v921_v16 = vpop.eup %920  ;;  %726 = vst.msk [vmem:[%s1121_s11 + $0x24] sm:$0xf] %vm716_vm1, %v693_v10  ;;  %v863_v17 = vadd.f32 -1.0, %v919_v13  ;;  %v407_v20 = vpop.f32.mrf.mxu3  ;;  %v608_v23 = vmul.f32 1.442695, %v550_v14  ;;  %v527_v24 = vmin.f32 %v1180_v11, 0.0  ;;  %v443_v41 = vmul.f32 %v1082_v52, %v387_v19 }
  0xb9   : > { %v923_v21 = vpop.eup %922  ;;  %v871_v22 = vadd.f32 -1.0, %v921_v16  ;;  %v350_v25 = vpop.f32.mrf.mxu0  ;;  %926 = vpow2.f32 %v592_v18  ;;  %v451_v43 = vmul.f32 %v1082_v52, %v407_v20  ;;  %vm495_vm14 = vcmp.gt.f32.partialorder %v1180_v11, 0.0 }
  0xba   : > { %v669_v26 = vsel %vm509_vm8, %v1125_v33, %v863_v17  ;;  %v848_v27 = vadd.f32 -1.0, %v923_v21  ;;  %928 = vpow2.f32 %v608_v23  ;;  %v562_v31 = vmul.f32 1.442695, %v527_v24  ;;  %v370_v32 = vpop.f32.mrf.mxu1  ;;  %v925_v35 = vpop.eup %924 }
  0xbb   : > { %v701_v29 = vpack.c.bf16 %v669_v26, %v669_v26  ;;  %v677_v30 = vsel %vm517_vm9, %v1128_v34, %v871_v22  ;;  %v535_v33 = vmin.f32 %v1192_v28, 0.0  ;;  %v856_v40 = vadd.f32 -1.0, %v925_v35 }
  0xbc   : > { %v709_v36 = vpack.c.bf16 %v677_v30, %v677_v30  ;;  %v654_v38 = vsel %vm494_vm10, %v1132_v37, %v848_v27  ;;  %930 = vpow2.f32 %v562_v31  ;;  %v428_v44 = vmul.f32 %v1082_v52, %v350_v25 }
  0xbd   : > { %734 = vst.msk [vmem:[%s1121_s11 + $0x44] sm:$0xf] %vm716_vm1, %v701_v29  ;;  %v686_v39 = vpack.c.bf16 %v654_v38, %v654_v38  ;;  %v578_v34 = vmul.f32 1.442695, %v535_v33  ;;  %v436_v37 = vmul.f32 %v1082_v52, %v370_v32  ;;  %v662_v45 = vsel %vm502_vm11, %v1141_v42, %v856_v40 }
  0xbe   : > { %742 = vst.msk [vmem:[%s1121_s11 + $0x64] sm:$0xf] %vm716_vm1, %v709_v36  ;;  %v1210_v46 = vadd.f32 %v1087_v53, %v443_v41  ;;  %v694_v48 = vpack.c.bf16 %v662_v45, %v662_v45  ;;  %v1213_v49 = vadd.f32 %v1087_v53, %v451_v43  ;;  %v1216_v50 = vadd.f32 %v1087_v53, %v428_v44 }
  0xbf   : > { %719 = vst.msk [vmem:[%s1121_s11 + $0x8] sm:$0xf] %vm716_vm1, %v686_v39  ;;  %v927_v47 = vpop.eup %926  ;;  %932 = vpow2.f32 %v578_v34  ;;  %v390_v51 = vpop.f32.mrf.mxu2  ;;  %v1221_v57 = vadd.f32 %v1087_v53, %v436_v37  ;;  %vm503_vm15 = vcmp.gt.f32.partialorder %v1192_v28, 0.0 }
  0xc0   : > { %v410_v54 = vpop.f32.mrf.mxu3  ;;  %v929_v55 = vpop.eup %928  ;;  %v864_v56 = vadd.f32 -1.0, %v927_v47  ;;  %v543_v42 = vmin.f32 %v1210_v46, 0.0  ;;  %727 = vst.msk [vmem:[%s1121_s11 + $0x28] sm:$0xf] %vm716_vm1, %v694_v48  ;;  %v551_v60 = vmin.f32 %v1213_v49, 0.0  ;;  %v528_v0 = vmin.f32 %v1216_v50, 0.0 }
  0xc1   : > { %v352_v58 = vpop.f32.mrf.mxu0  ;;  %v872_v59 = vadd.f32 -1.0, %v929_v55  ;;  %v536_v9 = vmin.f32 %v1221_v57, 0.0  ;;  %v444_v13 = vmul.f32 %v1082_v52, %v390_v51  ;;  %vm511_vm0 = vcmp.gt.f32.partialorder %v1210_v46, 0.0 }
  0xc2   : > { %v931_v61 = vpop.eup %930  ;;  %v670_v62 = vsel %vm510_vm12, %v1161_v5, %v864_v56  ;;  %v594_v63 = vmul.f32 1.442695, %v543_v42  ;;  %v610_v4 = vmul.f32 1.442695, %v551_v60  ;;  %v564_v7 = vmul.f32 1.442695, %v528_v0  ;;  %v372_v10 = vpop.f32.mrf.mxu1 }
  0xc3   : > { %v702_v1 = vpack.c.bf16 %v670_v62, %v670_v62  ;;  %v678_v2 = vsel %vm518_vm13, %v1169_v8, %v872_v59  ;;  %v849_v3 = vadd.f32 -1.0, %v931_v61  ;;  %v452_v8 = vmul.f32 %v1082_v52, %v410_v54 }
  0xc4   : > { %v710_v6 = vpack.c.bf16 %v678_v2, %v678_v2  ;;  %934 = vpow2.f32 %v594_v63  ;;  %v580_v16 = vmul.f32 1.442695, %v536_v9  ;;  %v1243_v17 = vadd.f32 %v1087_v53, %v444_v13 }
  0xc5   : > { %v933_v12 = vpop.eup %932  ;;  %735 = vst.msk [vmem:[%s1121_s11 + $0x48] sm:$0xf] %vm716_vm1, %v702_v1  ;;  %v655_v5 = vsel %vm495_vm14, %v1180_v11, %v849_v3  ;;  %936 = vpow2.f32 %v610_v4  ;;  %v1246_v18 = vadd.f32 %v1087_v53, %v452_v8  ;;  %v429_v19 = vmul.f32 %v1082_v52, %v352_v58 }
  0xc6   : > { %743 = vst.msk [vmem:[%s1121_s11 + $0x68] sm:$0xf] %vm716_vm1, %v710_v6  ;;  %v687_v14 = vpack.c.bf16 %v655_v5, %v655_v5  ;;  %v857_v15 = vadd.f32 -1.0, %v933_v12  ;;  %938 = vpow2.f32 %v564_v7  ;;  %v437_v11 = vmul.f32 %v1082_v52, %v372_v10 }
  0xc7   : > { %v392_v20 = vpop.f32.mrf.mxu2  ;;  %940 = vpow2.f32 %v580_v16  ;;  %v544_v26 = vmin.f32 %v1243_v17, 0.0  ;;  %vm519_vm2 = vcmp.gt.f32.partialorder %v1213_v49, 0.0  ;;  %vm496_vm3 = vcmp.gt.f32.partialorder %v1216_v50, 0.0 }
  0xc8   : > { %v412_v21 = vpop.f32.mrf.mxu3  ;;  %720 = vst.msk [vmem:[%s1121_s11 + $0xc] sm:$0xf] %vm716_vm1, %v687_v14  ;;  %v663_v22 = vsel %vm503_vm15, %v1192_v28, %v857_v15  ;;  %v445_v23 = vmul.f32 %v1082_v52, %v392_v20  ;;  %v552_v30 = vmin.f32 %v1246_v18, 0.0  ;;  %v1263_v28 = vadd.f32 %v1087_v53, %v429_v19 }
  0xc9   : > { %v453_v24 = vmul.f32 %v1082_v52, %v412_v21  ;;  %v695_v25 = vpack.c.bf16 %v663_v22, %v663_v22  ;;  %v355_v27 = vpop.f32.mrf.mxu0  ;;  %v596_v35 = vmul.f32 1.442695, %v544_v26  ;;  %v1268_v36 = vadd.f32 %v1087_v53, %v437_v11 }
  0xca   : > { %v935_v29 = vpop.eup %934  ;;  %v1271_v38 = vadd.f32 %v1087_v53, %v445_v23  ;;  %v612_v40 = vmul.f32 1.442695, %v552_v30  ;;  %v529_v41 = vmin.f32 %v1263_v28, 0.0  ;;  %v430_v37 = vmul.f32 %v1082_v52, %v355_v27  ;;  %v375_v54 = vpop.f32.mrf.mxu1 }
  0xcb   : > { %v937_v31 = vpop.eup %936  ;;  %728 = vst.msk [vmem:[%s1121_s11 + $0x2c] sm:$0xf] %vm716_vm1, %v695_v25  ;;  %v865_v32 = vadd.f32 -1.0, %v935_v29  ;;  %v1275_v34 = vadd.f32 %v1087_v53, %v453_v24  ;;  %942 = vpow2.f32 %v596_v35  ;;  %v537_v42 = vmin.f32 %v1268_v36, 0.0 }
  0xcc   : > { %v939_v33 = vpop.eup %938  ;;  %v873_v39 = vadd.f32 -1.0, %v937_v31  ;;  %944 = vpow2.f32 %v612_v40  ;;  %v566_v51 = vmul.f32 1.442695, %v529_v41  ;;  %vm504_vm4 = vcmp.gt.f32.partialorder %v1221_v57, 0.0 }
  0xcd   : > { %v671_v43 = vsel %vm511_vm0, %v1210_v46, %v865_v32  ;;  %v850_v44 = vadd.f32 -1.0, %v939_v33  ;;  %v941_v45 = vpop.eup %940  ;;  %vm512_vm5 = vcmp.gt.f32.partialorder %v1243_v17, 0.0  ;;  %v553_v62 = vmin.f32 %v1275_v34, 0.0 }
  0xce   : > { %v703_v47 = vpack.c.bf16 %v671_v43, %v671_v43  ;;  %v679_v48 = vsel %vm519_vm2, %v1213_v49, %v873_v39  ;;  %v858_v56 = vadd.f32 -1.0, %v941_v45  ;;  %946 = vpow2.f32 %v566_v51 }
  0xcf   : > { %v711_v55 = vpack.c.bf16 %v679_v48, %v679_v48  ;;  %v656_v46 = vsel %vm496_vm3, %v1216_v50, %v850_v44  ;;  %v545_v49 = vmin.f32 %v1271_v38, 0.0  ;;  %v395_v59 = vpop.f32.mrf.mxu2  ;;  %v582_v50 = vmul.f32 1.442695, %v537_v42 }
  0xd0   : > { %736 = vst.msk [vmem:[%s1121_s11 + $0x4c] sm:$0xf] %vm716_vm1, %v703_v47  ;;  %v688_v58 = vpack.c.bf16 %v656_v46, %v656_v46  ;;  %v415_v60 = vpop.f32.mrf.mxu3  ;;  %v664_v61 = vsel %vm504_vm4, %v1221_v57, %v858_v56  ;;  %v1300_v1 = vadd.f32 %v1087_v53, %v430_v37  ;;  %v438_v2 = vmul.f32 %v1082_v52, %v375_v54 }
  0xd1   : > { %744 = vst.msk [vmem:[%s1121_s11 + $0x6c] sm:$0xf] %vm716_vm1, %v711_v55  ;;  %v696_v63 = vpack.c.bf16 %v664_v61, %v664_v61  ;;  %v598_v0 = vmul.f32 1.442695, %v545_v49  ;;  %v943_v3 = vpop.eup %942  ;;  %948 = vpow2.f32 %v582_v50  ;;  %v614_v4 = vmul.f32 1.442695, %v553_v62  ;;  %v357_v7 = vpop.f32.mrf.mxu0 }
  0xd2   : > { %721 = vst.msk [vmem:[%s1121_s11 + $0x10] sm:$0xf] %vm716_vm1, %v688_v58  ;;  %v446_v57 = vmul.f32 %v1082_v52, %v395_v59  ;;  %v454_v6 = vmul.f32 %v1082_v52, %v415_v60  ;;  %v945_v9 = vpop.eup %944  ;;  %v866_v10 = vadd.f32 -1.0, %v943_v3  ;;  %vm520_vm6 = vcmp.gt.f32.partialorder %v1246_v18, 0.0 }
  0xd3   : > { %729 = vst.msk [vmem:[%s1121_s11 + $0x30] sm:$0xf] %vm716_vm1, %v696_v63  ;;  %950 = vpow2.f32 %v598_v0  ;;  %v530_v12 = vmin.f32 %v1300_v1, 0.0  ;;  %v874_v5 = vadd.f32 -1.0, %v945_v9  ;;  %v1310_v13 = vadd.f32 %v1087_v53, %v438_v2 }
  0xd4   : > { %952 = vpow2.f32 %v614_v4  ;;  %v1313_v8 = vadd.f32 %v1087_v53, %v446_v57  ;;  %v947_v14 = vpop.eup %946  ;;  %v672_v15 = vsel %vm512_vm5, %v1243_v17, %v866_v10  ;;  %v1319_v19 = vadd.f32 %v1087_v53, %v454_v6  ;;  %v377_v17 = vpop.f32.mrf.mxu1 }
  0xd5   : > { %v568_v16 = vmul.f32 1.442695, %v530_v12  ;;  %v431_v11 = vmul.f32 %v1082_v52, %v357_v7  ;;  %v704_v20 = vpack.c.bf16 %v672_v15, %v672_v15  ;;  %v680_v21 = vsel %vm520_vm6, %v1246_v18, %v874_v5 }
  0xd6   : > { %vm497_vm7 = vcmp.gt.f32.partialorder %v1263_v28, 0.0  ;;  %v851_v22 = vadd.f32 -1.0, %v947_v14  ;;  %v712_v23 = vpack.c.bf16 %v680_v21, %v680_v21  ;;  %vm505_vm8 = vcmp.gt.f32.partialorder %v1268_v36, 0.0 }
  0xd7   : > { %954 = vpow2.f32 %v568_v16  ;;  %v538_v24 = vmin.f32 %v1310_v13, 0.0  ;;  %v949_v25 = vpop.eup %948  ;;  %737 = vst.msk [vmem:[%s1121_s11 + $0x50] sm:$0xf] %vm716_vm1, %v704_v20  ;;  %vm513_vm9 = vcmp.gt.f32.partialorder %v1271_v38, 0.0  ;;  %v546_v18 = vmin.f32 %v1313_v8, 0.0  ;;  %v397_v37 = vpop.f32.mrf.mxu2 }
  0xd8   : > { %v657_v26 = vsel %vm497_vm7, %v1263_v28, %v851_v22  ;;  %v554_v27 = vmin.f32 %v1319_v19, 0.0  ;;  %745 = vst.msk [vmem:[%s1121_s11 + $0x70] sm:$0xf] %vm716_vm1, %v712_v23  ;;  %v859_v31 = vadd.f32 -1.0, %v949_v25  ;;  %v1335_v35 = vadd.f32 %v1087_v53, %v431_v11  ;;  %v417_v51 = vpop.f32.mrf.mxu3 }
  0xd9   : > { %v951_v29 = vpop.eup %950  ;;  %v689_v30 = vpack.c.bf16 %v657_v26, %v657_v26  ;;  %v584_v32 = vmul.f32 1.442695, %v538_v24  ;;  %v600_v40 = vmul.f32 1.442695, %v546_v18  ;;  %v439_v28 = vmul.f32 %v1082_v52, %v377_v17 }
  0xda   : > { %v953_v33 = vpop.eup %952  ;;  %v867_v39 = vadd.f32 -1.0, %v951_v29  ;;  %v616_v41 = vmul.f32 1.442695, %v554_v27  ;;  %v665_v43 = vsel %vm505_vm8, %v1268_v36, %v859_v31  ;;  %vm521_vm10 = vcmp.gt.f32.partialorder %v1275_v34, 0.0 }
  0xdb   : > { %722 = vst.msk [vmem:[%s1121_s11 + $0x14] sm:$0xf] %vm716_vm1, %v689_v30  ;;  %v875_v44 = vadd.f32 -1.0, %v953_v33  ;;  %956 = vpow2.f32 %v584_v32  ;;  %v697_v45 = vpack.c.bf16 %v665_v43, %v665_v43  ;;  %v531_v48 = vmin.f32 %v1335_v35, 0.0 }
  0xdc   : > { %v673_v47 = vsel %vm513_vm9, %v1271_v38, %v867_v39  ;;  %958 = vpow2.f32 %v600_v40  ;;  %v475_v46 = vadd.f32 %v1087_v53, %v439_v28  ;;  %v447_v49 = vmul.f32 %v1082_v52, %v397_v37 }
  0xdd   : > { %v955_v54 = vpop.eup %954  ;;  %v705_v55 = vpack.c.bf16 %v673_v47, %v673_v47  ;;  %v681_v36 = vsel %vm521_vm10, %v1275_v34, %v875_v44  ;;  %960 = vpow2.f32 %v616_v41  ;;  %730 = vst.msk [vmem:[%s1121_s11 + $0x34] sm:$0xf] %vm716_vm1, %v697_v45  ;;  %v570_v58 = vmul.f32 1.442695, %v531_v48 }
  0xde   : > { %v713_v56 = vpack.c.bf16 %v681_v36, %v681_v36  ;;  %v852_v42 = vadd.f32 -1.0, %v955_v54  ;;  %vm498_vm11 = vcmp.gt.f32.partialorder %v1300_v1, 0.0  ;;  %v539_v38 = vmin.f32 %v475_v46, 0.0 }
  0xdf   : > { %738 = vst.msk [vmem:[%s1121_s11 + $0x54] sm:$0xf] %vm716_vm1, %v705_v55  ;;  %v455_v59 = vmul.f32 %v1082_v52, %v417_v51  ;;  %962 = vpow2.f32 %v570_v58  ;;  %v483_v60 = vadd.f32 %v1087_v53, %v447_v49  ;;  %vm506_vm12 = vcmp.gt.f32.partialorder %v1310_v13, 0.0 }
  0xe0   : > { %746 = vst.msk [vmem:[%s1121_s11 + $0x74] sm:$0xf] %vm716_vm1, %v713_v56  ;;  %v658_v34 = vsel %vm498_vm11, %v1300_v1, %v852_v42  ;;  %v586_v62 = vmul.f32 1.442695, %v539_v38  ;;  %vm514_vm13 = vcmp.gt.f32.partialorder %v1313_v8, 0.0  ;;  %vm522_vm14 = vcmp.gt.f32.partialorder %v1319_v19, 0.0 }
  0xe1   : > { %v957_v61 = vpop.eup %956  ;;  %v690_v50 = vpack.c.bf16 %v658_v34, %v658_v34  ;;  %v491_v63 = vadd.f32 %v1087_v53, %v455_v59  ;;  %v547_v3 = vmin.f32 %v483_v60, 0.0  ;;  %vm499_vm15 = vcmp.gt.f32.partialorder %v1335_v35, 0.0 }
  0xe2   : > { %v959_v0 = vpop.eup %958  ;;  %v860_v2 = vadd.f32 -1.0, %v957_v61  ;;  %964 = vpow2.f32 %v586_v62  ;;  %vm507_vm0 = vcmp.gt.f32.partialorder %v475_v46, 0.0  ;;  %vm515_vm2 = vcmp.gt.f32.partialorder %v483_v60, 0.0 }
  0xe3   : > { %v961_v4 = vpop.eup %960  ;;  %723 = vst.msk [vmem:[%s1121_s11 + $0x18] sm:$0xf] %vm716_vm1, %v690_v50  ;;  %v868_v52 = vadd.f32 -1.0, %v959_v0  ;;  %v555_v1 = vmin.f32 %v491_v63, 0.0  ;;  %v602_v7 = vmul.f32 1.442695, %v547_v3 }
  0xe4   : > { %v666_v57 = vsel %vm506_vm12, %v1310_v13, %v860_v2  ;;  %v876_v6 = vadd.f32 -1.0, %v961_v4  ;;  %vm523_vm3 = vcmp.gt.f32.partialorder %v491_v63, 0.0 }
  0xe5   : > { %v698_v53 = vpack.c.bf16 %v666_v57, %v666_v57  ;;  %v674_v9 = vsel %vm514_vm13, %v1313_v8, %v868_v52  ;;  %v618_v10 = vmul.f32 1.442695, %v555_v1  ;;  %v963_v12 = vpop.eup %962  ;;  %966 = vpow2.f32 %v602_v7 }
  0xe6   : > { %v706_v5 = vpack.c.bf16 %v674_v9, %v674_v9  ;;  %v682_v14 = vsel %vm522_vm14, %v1319_v19, %v876_v6  ;;  %v853_v15 = vadd.f32 -1.0, %v963_v12 }
  0xe7   : > { %731 = vst.msk [vmem:[%s1121_s11 + $0x38] sm:$0xf] %vm716_vm1, %v698_v53  ;;  %v714_v13 = vpack.c.bf16 %v682_v14, %v682_v14  ;;  %968 = vpow2.f32 %v618_v10 }
  0xe8   : > { %739 = vst.msk [vmem:[%s1121_s11 + $0x58] sm:$0xf] %vm716_vm1, %v706_v5  ;;  %v965_v8 = vpop.eup %964  ;;  %v659_v16 = vsel %vm499_vm15, %v1335_v35, %v853_v15 }
  0xe9   : > { %747 = vst.msk [vmem:[%s1121_s11 + $0x78] sm:$0xf] %vm716_vm1, %v714_v13  ;;  %v691_v11 = vpack.c.bf16 %v659_v16, %v659_v16  ;;  %v861_v20 = vadd.f32 -1.0, %v965_v8 }
  0xeb   : > { %v967_v19 = vpop.eup %966  ;;  %724 = vst.msk [vmem:[%s1121_s11 + $0x1c] sm:$0xf] %vm716_vm1, %v691_v11  ;;  %v667_v21 = vsel %vm507_vm0, %v475_v46, %v861_v20 }
  0xec   : > { %v699_v23 = vpack.c.bf16 %v667_v21, %v667_v21  ;;  %v869_v24 = vadd.f32 -1.0, %v967_v19 }
  0xed   : > { %v969_v22 = vpop.eup %968 }
  0xee   : > { %v877_v17 = vadd.f32 -1.0, %v969_v22  ;;  %732 = vst.msk [vmem:[%s1121_s11 + $0x3c] sm:$0xf] %vm716_vm1, %v699_v23  ;;  %v675_v25 = vsel %vm515_vm2, %v483_v60, %v869_v24 }
  0xef   : > { %v707_v26 = vpack.c.bf16 %v675_v25, %v675_v25 }
  0xf0   : > { %v683_v18 = vsel %vm523_vm3, %v491_v63, %v877_v17 }
  0xf1   : > { %v715_v27 = vpack.c.bf16 %v683_v18, %v683_v18  ;;  %740 = vst.msk [vmem:[%s1121_s11 + $0x5c] sm:$0xf] %vm716_vm1, %v707_v26 }
  0xf3   : > { %748 = vst.msk [vmem:[%s1121_s11 + $0x7c] sm:$0xf] %vm716_vm1, %v715_v27 }
  0xf4 PF: > { %s14_s15 = sadd.s32 1, %s976_s15  }
  0xf5   : > { %p11_p4 = scmp.ge.s32.totalorder %s14_s15, 4  }
  0xf7   :  { %13 = sbr.rel (!%p11_p4) target bundleno = 1 (0x1), region = 66 }

// kernel: decoder_block_forward.5
= control target key start
LH: loop header
LB: loop body
LE: loop exit
PB: predicated region body
PF: predicated region fallthrough
CT: control target
= control target key end

     0   :  { %s1114_s15 = smov 0   ;;  %s1452_s0 = inlined_call_operand.vmem [shape: bf16[512,64], index: 0, kind: input, shape index: {}]   ;;  %s1453_s1 = inlined_call_operand.vmem [shape: bf16[64,128], index: 1, kind: input, shape index: {}]   ;;  %s1454_s2 = inlined_call_operand.vmem [shape: f32[1,128], index: 2, kind: input, shape index: {}]   ;;  %s1455_s3 = inlined_call_operand.vmem [shape: f32[1,128], index: 3, kind: input, shape index: {}]   ;;  %s1456_s4 = inlined_call_operand.vmem [shape: f32[512,128], index: 4, kind: output, shape index: {}]  }
   0x1 LB: > { %s836_s16 = sadd.s32 4294967295, %s1087_s15   ;;  %p840_p0 = scmp.ge.s32.totalorder %s1087_s15, 1  ;;  %s1087_s15 = sphi %s1114_s15, %s14_s15  }
   0x2   : > { %p163_p1 = scmp.lt.s32.totalorder %s1087_s15, 3 }
   0x4   : > { %p164_p2 = pnand %p840_p0, %p163_p1 }
   0x5   : > { %s841_s19 = sshll.u32 (!%p164_p2), %s836_s16, 5 }
   0x6   : > { %167 = sbr.rel (%p164_p2) target bundleno = 236 (0xec), region = 36  ;;  %p190_p3 = scmp.lt.s32.totalorder (!%p164_p2), %s841_s19, 63 }
   0xb   : > { %v994_v0 = vld [vmem:[%s1453_s1 + $0x18] sm:$0xff]  ;;  %v993_v1 = vld [vmem:[%s1453_s1 + $0x10] sm:$0xff]  ;;  %s1458_s19 = smov (!%p190_p3, %s841_s19), 63  ;;  %v992_v2 = vld [vmem:[%s1453_s1 + $0x8] sm:$0xff]  ;;  %vm346_vm0 = vcmask 523264  }
   0xc   : > { %399 = vmatpush.bf16.msra.mxu0 %v994_v0  ;;  %995 = vmatpush.bf16.msra.mxu1 %v994_v0  ;;  %s842_s24 = sshll.u32 %s1458_s19, 2  ;;  %v991_v3 = vld [vmem:[%s1453_s1] sm:$0xff]  ;;  %s844_s8 = sshll.u32 %s1458_s19, 3 }
   0xd   : > { %996 = vmatpush.bf16.msra.mxu2 %v994_v0  ;;  %997 = vmatpush.bf16.msra.mxu3 %v994_v0  ;;  %s1140_s29 = scalar_lea.vmem %s1452_s0, %s842_s24  ;;  %v1177_v20 = vld [vmem:[%s1454_s2] ss:$0 sm:$0xff]  ;;  %s1212_s11 = scalar_lea.vmem %s1456_s4, %s844_s8 }
   0xe   : > { %v975_v4 = vld [vmem:[%s1140_s29] sm:$0xff]  ;;  %v976_v8 = vld [vmem:[%s1140_s29 + $0x8] sm:$0xff]  ;;  %v977_v12 = vld [vmem:[%s1140_s29 + $0x10] sm:$0xff] }
   0xf   : > { %v979_v5 = vld [vmem:[%s1140_s29 + $0x20] sm:$0xff]  ;;  %v980_v9 = vld [vmem:[%s1140_s29 + $0x28] sm:$0xff]  ;;  %v981_v13 = vld [vmem:[%s1140_s29 + $0x30] sm:$0xff] }
  0x10   : > { %400 = vmatpush.bf16.msra.mxu0 %v993_v1  ;;  %998 = vmatpush.bf16.msra.mxu1 %v993_v1  ;;  %v983_v6 = vld [vmem:[%s1140_s29 + $0x40] sm:$0xff]  ;;  %v984_v10 = vld [vmem:[%s1140_s29 + $0x48] sm:$0xff]  ;;  %v985_v14 = vld [vmem:[%s1140_s29 + $0x50] sm:$0xff] }
  0x11   : > { %999 = vmatpush.bf16.msra.mxu2 %v993_v1  ;;  %1000 = vmatpush.bf16.msra.mxu3 %v993_v1  ;;  %v987_v7 = vld [vmem:[%s1140_s29 + $0x60] sm:$0xff]  ;;  %v988_v11 = vld [vmem:[%s1140_s29 + $0x68] sm:$0xff]  ;;  %v989_v15 = vld [vmem:[%s1140_s29 + $0x70] sm:$0xff] }
  0x12   : > { %v978_v16 = vld [vmem:[%s1140_s29 + $0x18] sm:$0xff]  ;;  %v1182_v21 = vld [vmem:[%s1455_s3] ss:$0 sm:$0xff] }
  0x13   : > { %v982_v17 = vld [vmem:[%s1140_s29 + $0x38] sm:$0xff] }
  0x14   : > { %401 = vmatpush.bf16.msra.mxu0 %v992_v2  ;;  %1001 = vmatpush.bf16.msra.mxu1 %v992_v2  ;;  %v986_v18 = vld [vmem:[%s1140_s29 + $0x58] sm:$0xff] }
  0x15   : > { %1002 = vmatpush.bf16.msra.mxu2 %v992_v2  ;;  %1003 = vmatpush.bf16.msra.mxu3 %v992_v2  ;;  %v990_v19 = vld [vmem:[%s1140_s29 + $0x78] sm:$0xff] }
  0x18   : > { %402 = vmatpush.bf16.msra.mxu0 %v991_v3  ;;  %1004 = vmatpush.bf16.msra.mxu1 %v991_v3 }
  0x19   : > { %1005 = vmatpush.bf16.msra.mxu2 %v991_v3  ;;  %1006 = vmatpush.bf16.msra.mxu3 %v991_v3 }
  0x1b   : > { %925 = vmatmul.msk.bf16.vlgmr.msra.gmra.mxu0 %vm346_vm0, %v975_v4  ;;  %929 = vmatmul.msk.bf16.vlgmr.msra.gmra.mxu1 %vm346_vm0, %v979_v5 }
  0x1c   : > { %933 = vmatmul.msk.bf16.vlgmr.msra.gmra.mxu2 %vm346_vm0, %v983_v6  ;;  %937 = vmatmul.msk.bf16.vlgmr.msra.gmra.mxu3 %vm346_vm0, %v987_v7 }
  0x2b   : > { %926 = vmatmul.msk.bf16.gmra.mxu0 %vm346_vm0, %v976_v8  ;;  %930 = vmatmul.msk.bf16.gmra.mxu1 %vm346_vm0, %v980_v9 }
  0x2c   : > { %934 = vmatmul.msk.bf16.gmra.mxu2 %vm346_vm0, %v984_v10  ;;  %938 = vmatmul.msk.bf16.gmra.mxu3 %vm346_vm0, %v988_v11 }
  0x3b   : > { %927 = vmatmul.msk.bf16.gmra.mxu0 %vm346_vm0, %v977_v12  ;;  %931 = vmatmul.msk.bf16.gmra.mxu1 %vm346_vm0, %v981_v13 }
  0x3c   : > { %935 = vmatmul.msk.bf16.gmra.mxu2 %vm346_vm0, %v985_v14  ;;  %939 = vmatmul.msk.bf16.gmra.mxu3 %vm346_vm0, %v989_v15 }
  0x4b   : > { %928 = vmatmul.msk.bf16.gmra.mxu0 %vm346_vm0, %v978_v16  ;;  %932 = vmatmul.msk.bf16.gmra.mxu1 %vm346_vm0, %v982_v17 }
  0x4c   : > { %936 = vmatmul.msk.bf16.gmra.mxu2 %vm346_vm0, %v986_v18  ;;  %940 = vmatmul.msk.bf16.gmra.mxu3 %vm346_vm0, %v990_v19 }
  0x98   : > { %v404_v22 = vpop.f32.mrf.mxu0  ;;  %v424_v23 = vpop.f32.mrf.mxu1 }
  0x99   : > { %v488_v24 = vmul.f32 %v1177_v20, %v404_v22  ;;  %v496_v25 = vmul.f32 %v1177_v20, %v424_v23 }
  0x9b   : > { %v524_v26 = vadd.f32 %v1182_v21, %v488_v24  ;;  %v532_v27 = vadd.f32 %v1182_v21, %v496_v25 }
  0x9d   : > { %v588_v28 = vmin.f32 %v524_v26, 0.0  ;;  %v596_v29 = vmin.f32 %v532_v27, 0.0  ;;  %vm556_vm1 = vcmp.gt.f32.partialorder %v524_v26, 0.0  ;;  %vm564_vm2 = vcmp.gt.f32.partialorder %v532_v27, 0.0 }
  0x9f   : > { %v620_v30 = vmul.f32 1.442695, %v588_v28  ;;  %v636_v31 = vmul.f32 1.442695, %v596_v29  ;;  %v444_v32 = vpop.f32.mrf.mxu2  ;;  %v464_v33 = vpop.f32.mrf.mxu3 }
  0xa0   : > { %v504_v34 = vmul.f32 %v1177_v20, %v444_v32  ;;  %v512_v35 = vmul.f32 %v1177_v20, %v464_v33  ;;  %v406_v36 = vpop.f32.mrf.mxu0  ;;  %v426_v37 = vpop.f32.mrf.mxu1 }
  0xa1   : > { %1017 = vpow2.f32 %v620_v30  ;;  %v489_v38 = vmul.f32 %v1177_v20, %v406_v36  ;;  %v497_v39 = vmul.f32 %v1177_v20, %v426_v37 }
  0xa2   : > { %1019 = vpow2.f32 %v636_v31  ;;  %v1193_v40 = vadd.f32 %v1182_v21, %v504_v34  ;;  %v1196_v41 = vadd.f32 %v1182_v21, %v512_v35 }
  0xa3   : > { %v1199_v42 = vadd.f32 %v1182_v21, %v489_v38  ;;  %v1202_v43 = vadd.f32 %v1182_v21, %v497_v39 }
  0xa4   : > { %v604_v44 = vmin.f32 %v1193_v40, 0.0  ;;  %v612_v45 = vmin.f32 %v1196_v41, 0.0  ;;  %vm572_vm3 = vcmp.gt.f32.partialorder %v1193_v40, 0.0  ;;  %vm580_vm4 = vcmp.gt.f32.partialorder %v1196_v41, 0.0 }
  0xa5   : > { %v589_v46 = vmin.f32 %v1199_v42, 0.0  ;;  %v597_v47 = vmin.f32 %v1202_v43, 0.0  ;;  %vm557_vm5 = vcmp.gt.f32.partialorder %v1199_v42, 0.0  ;;  %vm565_vm6 = vcmp.gt.f32.partialorder %v1202_v43, 0.0 }
  0xa6   : > { %v652_v48 = vmul.f32 1.442695, %v604_v44  ;;  %v668_v49 = vmul.f32 1.442695, %v612_v45 }
  0xa7   : > { %v1018_v50 = vpop.eup %1017  ;;  %v622_v51 = vmul.f32 1.442695, %v589_v46  ;;  %v638_v52 = vmul.f32 1.442695, %v597_v47  ;;  %v446_v53 = vpop.f32.mrf.mxu2 }
  0xa8   : > { %v466_v54 = vpop.f32.mrf.mxu3  ;;  %v1020_v55 = vpop.eup %1019  ;;  %v941_v56 = vadd.f32 -1.0, %v1018_v50  ;;  %1021 = vpow2.f32 %v652_v48  ;;  %v505_v57 = vmul.f32 %v1177_v20, %v446_v53 }
  0xa9   : > { %v513_v58 = vmul.f32 %v1177_v20, %v466_v54  ;;  %v409_v59 = vpop.f32.mrf.mxu0  ;;  %v429_v60 = vpop.f32.mrf.mxu1  ;;  %v949_v61 = vadd.f32 -1.0, %v1020_v55  ;;  %1023 = vpow2.f32 %v668_v49 }
  0xaa   : > { %v490_v62 = vmul.f32 %v1177_v20, %v409_v59  ;;  %v498_v63 = vmul.f32 %v1177_v20, %v429_v60  ;;  %v716_v0 = vsel %vm556_vm1, %v524_v26, %v941_v56  ;;  %1025 = vpow2.f32 %v622_v51 }
  0xab   : > { %v1220_v1 = vadd.f32 %v1182_v21, %v505_v57  ;;  %v1223_v2 = vadd.f32 %v1182_v21, %v513_v58  ;;  %748 = vst [vmem:[%s1212_s11] sm:$0xff] %v716_v0  ;;  %v724_v3 = vsel %vm564_vm2, %v532_v27, %v949_v61  ;;  %1027 = vpow2.f32 %v638_v52 }
  0xac   : > { %v1228_v4 = vadd.f32 %v1182_v21, %v490_v62  ;;  %v1231_v5 = vadd.f32 %v1182_v21, %v498_v63  ;;  %756 = vst [vmem:[%s1212_s11 + $0x40] sm:$0xff] %v724_v3 }
  0xad   : > { %v605_v6 = vmin.f32 %v1220_v1, 0.0  ;;  %v613_v7 = vmin.f32 %v1223_v2, 0.0  ;;  %vm573_vm7 = vcmp.gt.f32.partialorder %v1220_v1, 0.0  ;;  %vm581_vm8 = vcmp.gt.f32.partialorder %v1223_v2, 0.0 }
  0xae   : > { %v590_v8 = vmin.f32 %v1228_v4, 0.0  ;;  %v598_v9 = vmin.f32 %v1231_v5, 0.0  ;;  %v1022_v10 = vpop.eup %1021  ;;  %vm558_vm9 = vcmp.gt.f32.partialorder %v1228_v4, 0.0  ;;  %vm566_vm10 = vcmp.gt.f32.partialorder %v1231_v5, 0.0 }
  0xaf   : > { %v654_v11 = vmul.f32 1.442695, %v605_v6  ;;  %v670_v12 = vmul.f32 1.442695, %v613_v7  ;;  %v1024_v13 = vpop.eup %1023  ;;  %v957_v14 = vadd.f32 -1.0, %v1022_v10  ;;  %v449_v17 = vpop.f32.mrf.mxu2 }
  0xb0   : > { %v624_v15 = vmul.f32 1.442695, %v590_v8  ;;  %v640_v16 = vmul.f32 1.442695, %v598_v9  ;;  %v469_v18 = vpop.f32.mrf.mxu3  ;;  %v1026_v19 = vpop.eup %1025  ;;  %v965_v22 = vadd.f32 -1.0, %v1024_v13  ;;  %v506_v23 = vmul.f32 %v1177_v20, %v449_v17 }
  0xb1   : > { %1029 = vpow2.f32 %v654_v11  ;;  %v514_v24 = vmul.f32 %v1177_v20, %v469_v18  ;;  %v411_v25 = vpop.f32.mrf.mxu0  ;;  %v431_v26 = vpop.f32.mrf.mxu1  ;;  %v732_v28 = vsel %vm572_vm3, %v1193_v40, %v957_v14  ;;  %v942_v29 = vadd.f32 -1.0, %v1026_v19 }
  0xb2   : > { %v1028_v27 = vpop.eup %1027  ;;  %1031 = vpow2.f32 %v670_v12  ;;  %v491_v30 = vmul.f32 %v1177_v20, %v411_v25  ;;  %764 = vst [vmem:[%s1212_s11 + $0x80] sm:$0xff] %v732_v28  ;;  %v740_v31 = vsel %vm580_vm4, %v1196_v41, %v965_v22  ;;  %v1253_v33 = vadd.f32 %v1182_v21, %v506_v23 }
  0xb3   : > { %v950_v32 = vadd.f32 -1.0, %v1028_v27  ;;  %1033 = vpow2.f32 %v624_v15  ;;  %772 = vst [vmem:[%s1212_s11 + $0xc0] sm:$0xff] %v740_v31  ;;  %v717_v34 = vsel %vm557_vm5, %v1199_v42, %v942_v29  ;;  %v1260_v35 = vadd.f32 %v1182_v21, %v514_v24 }
  0xb4   : > { %1035 = vpow2.f32 %v640_v16  ;;  %v1263_v36 = vadd.f32 %v1182_v21, %v491_v30  ;;  %749 = vst [vmem:[%s1212_s11 + $0x8] sm:$0xff] %v717_v34  ;;  %v606_v38 = vmin.f32 %v1253_v33, 0.0  ;;  %v499_v39 = vmul.f32 %v1177_v20, %v431_v26 }
  0xb5   : > { %v725_v37 = vsel %vm565_vm6, %v1202_v43, %v950_v32  ;;  %v614_v40 = vmin.f32 %v1260_v35, 0.0  ;;  %vm574_vm11 = vcmp.gt.f32.partialorder %v1253_v33, 0.0  ;;  %vm582_vm12 = vcmp.gt.f32.partialorder %v1260_v35, 0.0 }
  0xb6   : > { %757 = vst [vmem:[%s1212_s11 + $0x48] sm:$0xff] %v725_v37  ;;  %v591_v41 = vmin.f32 %v1263_v36, 0.0  ;;  %v656_v44 = vmul.f32 1.442695, %v606_v38  ;;  %v1277_v45 = vadd.f32 %v1182_v21, %v499_v39  ;;  %vm559_vm13 = vcmp.gt.f32.partialorder %v1263_v36, 0.0 }
  0xb7   : > { %v1030_v42 = vpop.eup %1029  ;;  %v672_v47 = vmul.f32 1.442695, %v614_v40  ;;  %v451_v49 = vpop.f32.mrf.mxu2 }
  0xb8   : > { %v1032_v46 = vpop.eup %1031  ;;  %v958_v43 = vadd.f32 -1.0, %v1030_v42  ;;  %v626_v48 = vmul.f32 1.442695, %v591_v41  ;;  %v471_v50 = vpop.f32.mrf.mxu3  ;;  %1037 = vpow2.f32 %v656_v44  ;;  %v599_v53 = vmin.f32 %v1277_v45, 0.0 }
  0xb9   : > { %v1034_v51 = vpop.eup %1033  ;;  %v966_v52 = vadd.f32 -1.0, %v1032_v46  ;;  %v414_v54 = vpop.f32.mrf.mxu0  ;;  %1039 = vpow2.f32 %v672_v47  ;;  %v507_v59 = vmul.f32 %v1177_v20, %v451_v49  ;;  %vm567_vm14 = vcmp.gt.f32.partialorder %v1277_v45, 0.0 }
  0xba   : > { %v434_v55 = vpop.f32.mrf.mxu1  ;;  %v1036_v56 = vpop.eup %1035  ;;  %v733_v57 = vsel %vm573_vm7, %v1220_v1, %v958_v43  ;;  %v943_v58 = vadd.f32 -1.0, %v1034_v51  ;;  %1041 = vpow2.f32 %v626_v48  ;;  %v642_v62 = vmul.f32 1.442695, %v599_v53 }
  0xbb   : > { %765 = vst [vmem:[%s1212_s11 + $0x88] sm:$0xff] %v733_v57  ;;  %v741_v60 = vsel %vm581_vm8, %v1223_v2, %v966_v52  ;;  %v951_v61 = vadd.f32 -1.0, %v1036_v56  ;;  %v1295_v0 = vadd.f32 %v1182_v21, %v507_v59  ;;  %v515_v1 = vmul.f32 %v1177_v20, %v471_v50 }
  0xbc   : > { %773 = vst [vmem:[%s1212_s11 + $0xc8] sm:$0xff] %v741_v60  ;;  %v718_v63 = vsel %vm558_vm9, %v1228_v4, %v943_v58  ;;  %v492_v3 = vmul.f32 %v1177_v20, %v414_v54  ;;  %1043 = vpow2.f32 %v642_v62  ;;  %v500_v6 = vmul.f32 %v1177_v20, %v434_v55 }
  0xbd   : > { %750 = vst [vmem:[%s1212_s11 + $0x10] sm:$0xff] %v718_v63  ;;  %v726_v2 = vsel %vm566_vm10, %v1231_v5, %v951_v61  ;;  %v607_v7 = vmin.f32 %v1295_v0, 0.0  ;;  %v1307_v4 = vadd.f32 %v1182_v21, %v515_v1  ;;  %vm575_vm15 = vcmp.gt.f32.partialorder %v1295_v0, 0.0 }
  0xbe   : > { %758 = vst [vmem:[%s1212_s11 + $0x50] sm:$0xff] %v726_v2  ;;  %v1310_v8 = vadd.f32 %v1182_v21, %v492_v3  ;;  %v1038_v9 = vpop.eup %1037  ;;  %v1314_v10 = vadd.f32 %v1182_v21, %v500_v6 }
  0xbf   : > { %v1040_v11 = vpop.eup %1039  ;;  %v959_v5 = vadd.f32 -1.0, %v1038_v9  ;;  %v658_v12 = vmul.f32 1.442695, %v607_v7  ;;  %v615_v13 = vmin.f32 %v1307_v4, 0.0  ;;  %v454_v14 = vpop.f32.mrf.mxu2  ;;  %vm583_vm0 = vcmp.gt.f32.partialorder %v1307_v4, 0.0 }
  0xc0   : > { %v474_v15 = vpop.f32.mrf.mxu3  ;;  %v1042_v16 = vpop.eup %1041  ;;  %v967_v17 = vadd.f32 -1.0, %v1040_v11  ;;  %v592_v18 = vmin.f32 %v1310_v8, 0.0  ;;  %v600_v29 = vmin.f32 %v1314_v10, 0.0  ;;  %v508_v30 = vmul.f32 %v1177_v20, %v454_v14 }
  0xc1   : > { %v416_v19 = vpop.f32.mrf.mxu0  ;;  %v734_v23 = vsel %vm574_vm11, %v1253_v33, %v959_v5  ;;  %v944_v24 = vadd.f32 -1.0, %v1042_v16  ;;  %1045 = vpow2.f32 %v658_v12  ;;  %v674_v25 = vmul.f32 1.442695, %v615_v13 }
  0xc2   : > { %v436_v22 = vpop.f32.mrf.mxu1  ;;  %v1044_v26 = vpop.eup %1043  ;;  %766 = vst [vmem:[%s1212_s11 + $0x90] sm:$0xff] %v734_v23  ;;  %v742_v27 = vsel %vm582_vm12, %v1260_v35, %v967_v17  ;;  %v628_v28 = vmul.f32 1.442695, %v592_v18  ;;  %v516_v33 = vmul.f32 %v1177_v20, %v474_v15  ;;  %v644_v34 = vmul.f32 1.442695, %v600_v29 }
  0xc3   : > { %774 = vst [vmem:[%s1212_s11 + $0xd0] sm:$0xff] %v742_v27  ;;  %v719_v31 = vsel %vm559_vm13, %v1263_v36, %v944_v24  ;;  %v952_v32 = vadd.f32 -1.0, %v1044_v26  ;;  %1047 = vpow2.f32 %v674_v25  ;;  %v1337_v35 = vadd.f32 %v1182_v21, %v508_v30 }
  0xc4   : > { %751 = vst [vmem:[%s1212_s11 + $0x18] sm:$0xff] %v719_v31  ;;  %1049 = vpow2.f32 %v628_v28  ;;  %v493_v37 = vmul.f32 %v1177_v20, %v416_v19  ;;  %v1344_v39 = vadd.f32 %v1182_v21, %v516_v33  ;;  %v501_v36 = vmul.f32 %v1177_v20, %v436_v22 }
  0xc5   : > { %v727_v38 = vsel %vm567_vm14, %v1277_v45, %v952_v32  ;;  %1051 = vpow2.f32 %v644_v34  ;;  %v608_v40 = vmin.f32 %v1337_v35, 0.0  ;;  %vm560_vm1 = vcmp.gt.f32.partialorder %v1310_v8, 0.0 }
  0xc6   : > { %759 = vst [vmem:[%s1212_s11 + $0x58] sm:$0xff] %v727_v38  ;;  %v1350_v41 = vadd.f32 %v1182_v21, %v493_v37  ;;  %v616_v44 = vmin.f32 %v1344_v39, 0.0  ;;  %v1355_v46 = vadd.f32 %v1182_v21, %v501_v36  ;;  %vm568_vm2 = vcmp.gt.f32.partialorder %v1314_v10, 0.0 }
  0xc7   : > { %v1046_v42 = vpop.eup %1045  ;;  %v456_v45 = vpop.f32.mrf.mxu2  ;;  %v660_v48 = vmul.f32 1.442695, %v608_v40  ;;  %vm576_vm3 = vcmp.gt.f32.partialorder %v1337_v35, 0.0  ;;  %vm584_vm4 = vcmp.gt.f32.partialorder %v1344_v39, 0.0 }
  0xc8   : > { %v476_v43 = vpop.f32.mrf.mxu3  ;;  %v960_v47 = vadd.f32 -1.0, %v1046_v42  ;;  %v593_v49 = vmin.f32 %v1350_v41, 0.0  ;;  %v676_v51 = vmul.f32 1.442695, %v616_v44  ;;  %v601_v52 = vmin.f32 %v1355_v46, 0.0 }
  0xc9   : > { %v1048_v50 = vpop.eup %1047  ;;  %v509_v53 = vmul.f32 %v1177_v20, %v456_v45  ;;  %v419_v54 = vpop.f32.mrf.mxu0  ;;  %1053 = vpow2.f32 %v660_v48  ;;  %v517_v3 = vmul.f32 %v1177_v20, %v476_v43  ;;  %vm561_vm5 = vcmp.gt.f32.partialorder %v1350_v41, 0.0 }
  0xca   : > { %v439_v55 = vpop.f32.mrf.mxu1  ;;  %v1050_v56 = vpop.eup %1049  ;;  %v735_v57 = vsel %vm575_vm15, %v1295_v0, %v960_v47  ;;  %v968_v58 = vadd.f32 -1.0, %v1048_v50  ;;  %v630_v59 = vmul.f32 1.442695, %v593_v49  ;;  %1055 = vpow2.f32 %v676_v51 }
  0xcb   : > { %767 = vst [vmem:[%s1212_s11 + $0x98] sm:$0xff] %v735_v57  ;;  %v945_v60 = vadd.f32 -1.0, %v1050_v56  ;;  %v646_v61 = vmul.f32 1.442695, %v601_v52  ;;  %v1367_v62 = vadd.f32 %v1182_v21, %v509_v53  ;;  %v1052_v63 = vpop.eup %1051  ;;  %v494_v0 = vmul.f32 %v1177_v20, %v419_v54 }
  0xcc   : > { %v743_v1 = vsel %vm583_vm0, %v1307_v4, %v968_v58  ;;  %1057 = vpow2.f32 %v630_v59  ;;  %v953_v6 = vadd.f32 -1.0, %v1052_v63  ;;  %v1382_v4 = vadd.f32 %v1182_v21, %v517_v3 }
  0xcd   : > { %775 = vst [vmem:[%s1212_s11 + $0xd8] sm:$0xff] %v743_v1  ;;  %v720_v2 = vsel %vm560_vm1, %v1310_v8, %v945_v60  ;;  %1059 = vpow2.f32 %v646_v61  ;;  %v609_v7 = vmin.f32 %v1367_v62, 0.0  ;;  %v1385_v9 = vadd.f32 %v1182_v21, %v494_v0 }
  0xce   : > { %752 = vst [vmem:[%s1212_s11 + $0x20] sm:$0xff] %v720_v2  ;;  %v502_v11 = vmul.f32 %v1177_v20, %v439_v55  ;;  %v728_v5 = vsel %vm568_vm2, %v1314_v10, %v953_v6  ;;  %v617_v15 = vmin.f32 %v1382_v4, 0.0  ;;  %vm569_vm6 = vcmp.gt.f32.partialorder %v1355_v46, 0.0 }
  0xcf   : > { %v459_v8 = vpop.f32.mrf.mxu2  ;;  %v1054_v13 = vpop.eup %1053  ;;  %760 = vst [vmem:[%s1212_s11 + $0x60] sm:$0xff] %v728_v5  ;;  %v662_v14 = vmul.f32 1.442695, %v609_v7  ;;  %v594_v18 = vmin.f32 %v1385_v9, 0.0  ;;  %vm577_vm7 = vcmp.gt.f32.partialorder %v1367_v62, 0.0  ;;  %vm585_vm8 = vcmp.gt.f32.partialorder %v1382_v4, 0.0 }
  0xd0   : > { %v479_v12 = vpop.f32.mrf.mxu3  ;;  %v1056_v16 = vpop.eup %1055  ;;  %v961_v17 = vadd.f32 -1.0, %v1054_v13  ;;  %v1396_v10 = vadd.f32 %v1182_v21, %v502_v11  ;;  %v510_v19 = vmul.f32 %v1177_v20, %v459_v8  ;;  %v678_v24 = vmul.f32 1.442695, %v617_v15 }
  0xd1   : > { %v969_v23 = vadd.f32 -1.0, %v1056_v16  ;;  %1061 = vpow2.f32 %v662_v14  ;;  %v518_v25 = vmul.f32 %v1177_v20, %v479_v12  ;;  %v632_v29 = vmul.f32 1.442695, %v594_v18  ;;  %v421_v30 = vpop.f32.mrf.mxu0 }
  0xd2   : > { %v1058_v22 = vpop.eup %1057  ;;  %v736_v27 = vsel %vm576_vm3, %v1337_v35, %v961_v17  ;;  %v441_v31 = vpop.f32.mrf.mxu1  ;;  %1063 = vpow2.f32 %v678_v24  ;;  %v602_v34 = vmin.f32 %v1396_v10, 0.0  ;;  %v546_v37 = vadd.f32 %v1182_v21, %v510_v19 }
  0xd3   : > { %v1060_v26 = vpop.eup %1059  ;;  %v946_v28 = vadd.f32 -1.0, %v1058_v22  ;;  %768 = vst [vmem:[%s1212_s11 + $0xa0] sm:$0xff] %v736_v27  ;;  %v744_v32 = vsel %vm584_vm4, %v1344_v39, %v969_v23  ;;  %1065 = vpow2.f32 %v632_v29  ;;  %v1415_v38 = vadd.f32 %v1182_v21, %v518_v25 }
  0xd4   : > { %v954_v33 = vadd.f32 -1.0, %v1060_v26  ;;  %776 = vst [vmem:[%s1212_s11 + $0xe0] sm:$0xff] %v744_v32  ;;  %v648_v40 = vmul.f32 1.442695, %v602_v34  ;;  %v495_v39 = vmul.f32 %v1177_v20, %v421_v30  ;;  %v503_v42 = vmul.f32 %v1177_v20, %v441_v31 }
  0xd5   : > { %v721_v35 = vsel %vm561_vm5, %v1350_v41, %v946_v28  ;;  %v610_v44 = vmin.f32 %v546_v37, 0.0  ;;  %v618_v45 = vmin.f32 %v1415_v38, 0.0  ;;  %vm562_vm9 = vcmp.gt.f32.partialorder %v1385_v9, 0.0 }
  0xd6   : > { %753 = vst [vmem:[%s1212_s11 + $0x28] sm:$0xff] %v721_v35  ;;  %v729_v36 = vsel %vm569_vm6, %v1355_v46, %v954_v33  ;;  %1067 = vpow2.f32 %v648_v40  ;;  %v531_v48 = vadd.f32 %v1182_v21, %v495_v39  ;;  %v539_v49 = vadd.f32 %v1182_v21, %v503_v42 }
  0xd7   : > { %761 = vst [vmem:[%s1212_s11 + $0x68] sm:$0xff] %v729_v36  ;;  %v461_v43 = vpop.f32.mrf.mxu2  ;;  %v1062_v47 = vpop.eup %1061  ;;  %v664_v51 = vmul.f32 1.442695, %v610_v44  ;;  %v680_v52 = vmul.f32 1.442695, %v618_v45  ;;  %vm570_vm10 = vcmp.gt.f32.partialorder %v1396_v10, 0.0 }
  0xd8   : > { %v481_v41 = vpop.f32.mrf.mxu3  ;;  %v511_v46 = vmul.f32 %v1177_v20, %v461_v43  ;;  %v962_v50 = vadd.f32 -1.0, %v1062_v47  ;;  %v1064_v54 = vpop.eup %1063  ;;  %v595_v55 = vmin.f32 %v531_v48, 0.0  ;;  %v603_v56 = vmin.f32 %v539_v49, 0.0 }
  0xd9   : > { %v519_v53 = vmul.f32 %v1177_v20, %v481_v41  ;;  %v1066_v57 = vpop.eup %1065  ;;  %v970_v59 = vadd.f32 -1.0, %v1064_v54  ;;  %1069 = vpow2.f32 %v664_v51  ;;  %vm578_vm11 = vcmp.gt.f32.partialorder %v546_v37, 0.0 }
  0xda   : > { %v737_v58 = vsel %vm577_vm7, %v1367_v62, %v962_v50  ;;  %v547_v60 = vadd.f32 %v1182_v21, %v511_v46  ;;  %v947_v61 = vadd.f32 -1.0, %v1066_v57  ;;  %1071 = vpow2.f32 %v680_v52 }
  0xdb   : > { %769 = vst [vmem:[%s1212_s11 + $0xa8] sm:$0xff] %v737_v58  ;;  %v634_v20 = vmul.f32 1.442695, %v595_v55  ;;  %v650_v63 = vmul.f32 1.442695, %v603_v56  ;;  %v745_v1 = vsel %vm585_vm8, %v1382_v4, %v970_v59  ;;  %v555_v0 = vadd.f32 %v1182_v21, %v519_v53 }
  0xdc   : > { %v611_v3 = vmin.f32 %v547_v60, 0.0  ;;  %v1068_v2 = vpop.eup %1067  ;;  %777 = vst [vmem:[%s1212_s11 + $0xe8] sm:$0xff] %v745_v1  ;;  %v722_v62 = vsel %vm562_vm9, %v1385_v9, %v947_v61  ;;  %vm586_vm12 = vcmp.gt.f32.partialorder %v1415_v38, 0.0  ;;  %vm563_vm13 = vcmp.gt.f32.partialorder %v531_v48, 0.0 }
  0xdd   : > { %1073 = vpow2.f32 %v634_v20  ;;  %754 = vst [vmem:[%s1212_s11 + $0x30] sm:$0xff] %v722_v62  ;;  %v955_v6 = vadd.f32 -1.0, %v1068_v2  ;;  %v619_v11 = vmin.f32 %v555_v0, 0.0  ;;  %vm571_vm14 = vcmp.gt.f32.partialorder %v539_v49, 0.0 }
  0xde   : > { %1075 = vpow2.f32 %v650_v63  ;;  %v666_v7 = vmul.f32 1.442695, %v611_v3  ;;  %vm579_vm15 = vcmp.gt.f32.partialorder %v547_v60, 0.0  ;;  %vm587_vm0 = vcmp.gt.f32.partialorder %v555_v0, 0.0 }
  0xdf   : > { %v1070_v4 = vpop.eup %1069  ;;  %v730_v5 = vsel %vm570_vm10, %v1396_v10, %v955_v6  ;;  %v682_v12 = vmul.f32 1.442695, %v619_v11 }
  0xe0   : > { %1077 = vpow2.f32 %v666_v7  ;;  %v1072_v8 = vpop.eup %1071  ;;  %762 = vst [vmem:[%s1212_s11 + $0x70] sm:$0xff] %v730_v5  ;;  %v963_v21 = vadd.f32 -1.0, %v1070_v4 }
  0xe1   : > { %v971_v9 = vadd.f32 -1.0, %v1072_v8  ;;  %1079 = vpow2.f32 %v682_v12 }
  0xe2   : > { %v738_v14 = vsel %vm578_vm11, %v546_v37, %v963_v21 }
  0xe3   : > { %v1074_v13 = vpop.eup %1073  ;;  %770 = vst [vmem:[%s1212_s11 + $0xb0] sm:$0xff] %v738_v14  ;;  %v746_v16 = vsel %vm586_vm12, %v1415_v38, %v971_v9 }
  0xe4   : > { %v1076_v15 = vpop.eup %1075  ;;  %v948_v17 = vadd.f32 -1.0, %v1074_v13  ;;  %778 = vst [vmem:[%s1212_s11 + $0xf0] sm:$0xff] %v746_v16 }
  0xe5   : > { %v956_v18 = vadd.f32 -1.0, %v1076_v15 }
  0xe6   : > { %v1078_v10 = vpop.eup %1077  ;;  %v723_v19 = vsel %vm563_vm13, %v531_v48, %v948_v17 }
  0xe7   : > { %755 = vst [vmem:[%s1212_s11 + $0x38] sm:$0xff] %v723_v19  ;;  %v731_v22 = vsel %vm571_vm14, %v539_v49, %v956_v18  ;;  %v964_v23 = vadd.f32 -1.0, %v1078_v10  ;;  %v1080_v24 = vpop.eup %1079 }
  0xe8   : > { %763 = vst [vmem:[%s1212_s11 + $0x78] sm:$0xff] %v731_v22  ;;  %v972_v26 = vadd.f32 -1.0, %v1080_v24 }
  0xe9   : > { %v739_v25 = vsel %vm579_vm15, %v547_v60, %v964_v23 }
  0xea   : > { %771 = vst [vmem:[%s1212_s11 + $0xb8] sm:$0xff] %v739_v25  ;;  %v747_v27 = vsel %vm587_vm0, %v555_v0, %v972_v26 }
  0xeb   : > { %779 = vst [vmem:[%s1212_s11 + $0xf8] sm:$0xff] %v747_v27 }
  0xec PF: > { %s14_s15 = sadd.s32 1, %s1087_s15  }
  0xed   : > { %p11_p4 = scmp.ge.s32.totalorder %s14_s15, 4  }
  0xef   :  { %13 = sbr.rel (!%p11_p4) target bundleno = 1 (0x1), region = 66 }

// kernel: decoder_block_forward.4
= control target key start
LH: loop header
LB: loop body
LE: loop exit
PB: predicated region body
PF: predicated region fallthrough
CT: control target
= control target key end

     0   :  { %s1721_s15 = smov 0   ;;  %s2057_s0 = inlined_call_operand.vmem [shape: bf16[2,16,16,16], index: 0, kind: input, shape index: {}]   ;;  %s2058_s1 = inlined_call_operand.vmem [shape: bf16[4,16,64], index: 1, kind: input, shape index: {}]   ;;  %s2059_s2 = inlined_call_operand.vmem [shape: f32[1,64], index: 2, kind: input, shape index: {}]   ;;  %s2060_s3 = inlined_call_operand.vmem [shape: f32[1,64], index: 3, kind: input, shape index: {}]   ;;  %s2061_s4 = inlined_call_operand.vmem [shape: bf16[2,256,64], index: 4, kind: output, shape index: {}]  }
   0x1 LB: > { %s1395_s16 = sadd.s32 4294967295, %s1693_s15   ;;  %p1399_p0 = scmp.ge.s32.totalorder %s1693_s15, 1  ;;  %s1693_s15 = sphi %s1721_s15, %s14_s15  }
   0x2   : > { %p162_p1 = scmp.lt.s32.totalorder %s1693_s15, 3 }
   0x4   : > { %p163_p2 = pnand %p1399_p0, %p162_p1 }
   0x5   : > { %p188_p3 = scmp.lt.s32.totalorder (!%p163_p2), %s1395_s16, 1 }
   0x6   : > { %166 = sbr.rel (%p163_p2) target bundleno = 425 (0x1a9), region = 36 }
   0xb   : > { %v1608_v0 = vld [vmem:[%s2058_s1 + $0x10] sm:$0xff]  ;;  %v1606_v1 = vld [vmem:[%s2058_s1] sm:$0xff]  ;;  %v1607_v2 = vld [vmem:[%s2058_s1 + $0x8] sm:$0xff]  ;;  %s2065_s16 = smov (!%p188_p3, %s1395_s16), 1  ;;  %vm481_vm0 = vcmask 130048   ;;  %vm439_vm1 = vcmask 1047552  }
   0xc   : > { %v1609_v3 = vld [vmem:[%s2058_s1 + $0x18] sm:$0xff]  ;;  %764 = vmatpush.bf16.msra.mxu2 %v1608_v0  ;;  %664 = vmatpush.bf16.msra.mxu1 %v1606_v1  ;;  %s1588_s25 = sshll.u32 %s2065_s16, 7  ;;  %vm440_vm2 = vsmask.f32 7424  ;;  %vm1307_vm5 = vcmask 519168  }
   0xd   : > { %537 = vmatpush.bf16.msra.mxu0 %v1607_v2  ;;  %897 = vmatpush.bf16.msra.mxu3 %v1609_v3  ;;  %s1749_s28 = scalar_lea.vmem %s2057_s0, %s1588_s25  ;;  %vm1755_vm3 = vmand %vm439_vm1, %vm440_vm2  ;;  %s1853_s9 = scalar_lea.vmem %s2061_s4, %s1588_s25 }
   0xe   : > { %v1591_v4 = vld [vmem:[%s1749_s28 + $0x8] sm:$0xff]  ;;  %v1590_v5 = vld [vmem:[%s1749_s28] sm:$0xff]  ;;  %v1592_v15 = vld [vmem:[%s1749_s28 + $0x10] sm:$0xff] }
   0xf   : > { %1516 = vmatmul.msk.bf16.vlgmr.msra.gmra.mxu2 %vm481_vm0, %v1591_v4  ;;  %1494 = vmatmul.msk.bf16.vlgmr.msra.gmra.mxu1 %vm481_vm0, %v1590_v5  ;;  %v312_v6 = vshrl.u32 %v1590_v5, 16  ;;  %v314_v7 = vshll.u32 %v1590_v5, 16  ;;  %v319_v8 = vshrl.u32 %v1591_v4, 16  ;;  %v321_v9 = vshll.u32 %v1591_v4, 16  ;;  %v1593_v23 = vld [vmem:[%s1749_s28 + $0x18] sm:$0xff]  ;;  %v1594_v29 = vld [vmem:[%s1749_s28 + $0x20] sm:$0xff] }
  0x10   : > { %v328_v18 = vshll.u32 %v1592_v15, 16  ;;  %v326_v19 = vshrl.u32 %v1592_v15, 16  ;;  %v335_v24 = vshll.u32 %v1593_v23, 16  ;;  %v333_v25 = vshrl.u32 %v1593_v23, 16  ;;  %v1595_v35 = vld [vmem:[%s1749_s28 + $0x28] sm:$0xff]  ;;  %v1596_v41 = vld [vmem:[%s1749_s28 + $0x30] sm:$0xff] }
  0x11   : > { %v316_v10 = vrot.slane %v314_v7, 1  ;;  %v323_v11 = vrot.slane %v321_v9, 1  ;;  %v342_v30 = vshll.u32 %v1594_v29, 16  ;;  %v340_v31 = vshrl.u32 %v1594_v29, 16  ;;  %v1597_v47 = vld [vmem:[%s1749_s28 + $0x38] sm:$0xff]  ;;  %v1598_v53 = vld [vmem:[%s1749_s28 + $0x40] sm:$0xff] }
  0x12   : > { %v330_v20 = vrot.slane %v328_v18, 1  ;;  %v337_v26 = vrot.slane %v335_v24, 1  ;;  %v349_v36 = vshll.u32 %v1595_v35, 16  ;;  %v347_v37 = vshrl.u32 %v1595_v35, 16  ;;  %v1599_v59 = vld [vmem:[%s1749_s28 + $0x48] sm:$0xff] }
  0x13   : > { %v317_v13 = vor.u32 %v316_v10, %v312_v6  ;;  %v324_v14 = vor.u32 %v323_v11, %v319_v8  ;;  %v344_v32 = vrot.slane %v342_v30, 1  ;;  %v356_v42 = vshll.u32 %v1596_v41, 16  ;;  %v1825_v9 = vld [vmem:[%s2059_s2] ss:$0 sm:$0xff] }
  0x14   : > { %v331_v21 = vor.u32 %v330_v20, %v326_v19  ;;  %v338_v27 = vor.u32 %v337_v26, %v333_v25  ;;  %v351_v38 = vrot.slane %v349_v36, 1  ;;  %v354_v43 = vshrl.u32 %v1596_v41, 16 }
  0x15   : > { %v442_v16 = vsel %vm1755_vm3, %v317_v13, 0  ;;  %v443_v17 = vsel %vm1755_vm3, %v324_v14, 0  ;;  %v345_v33 = vor.u32 %v344_v32, %v340_v31  ;;  %v358_v44 = vrot.slane %v356_v42, 1  ;;  %v1830_v13 = vld [vmem:[%s2060_s3] ss:$0 sm:$0xff]  ;;  %v1839_v31 = vld [vmem:[%s1749_s28 + $0x58] sm:$0xff] }
  0x16   : > { %1474 = vmatmul.msk.bf16.vlgmr.msra.gmra.mxu0 %vm481_vm0, %v442_v16  ;;  %1538 = vmatmul.msk.bf16.vlgmr.msra.gmra.mxu3 %vm481_vm0, %v443_v17  ;;  %v444_v22 = vsel %vm1755_vm3, %v331_v21, 0  ;;  %v445_v28 = vsel %vm1755_vm3, %v338_v27, 0  ;;  %v352_v39 = vor.u32 %v351_v38, %v347_v37  ;;  %v363_v48 = vshll.u32 %v1597_v47, 16 }
  0x17   : > { %v446_v34 = vsel %vm1755_vm3, %v345_v33, 0  ;;  %v359_v45 = vor.u32 %v358_v44, %v354_v43  ;;  %v361_v49 = vshrl.u32 %v1597_v47, 16  ;;  %v370_v54 = vshll.u32 %v1598_v53, 16 }
  0x18   : > { %v447_v40 = vsel %vm1755_vm3, %v352_v39, 0  ;;  %v365_v50 = vrot.slane %v363_v48, 1  ;;  %v368_v55 = vshrl.u32 %v1598_v53, 16  ;;  %v377_v60 = vshll.u32 %v1599_v59, 16 }
  0x19   : > { %v448_v46 = vsel %vm1755_vm3, %v359_v45, 0  ;;  %v372_v56 = vrot.slane %v370_v54, 1  ;;  %v375_v61 = vshrl.u32 %v1599_v59, 16  ;;  %v391_v37 = vshll.u32 %v1839_v31, 16 }
  0x1a   : > { %v366_v51 = vor.u32 %v365_v50, %v361_v49  ;;  %v379_v62 = vrot.slane %v377_v60, 1 }
  0x1b   : > { %v373_v57 = vor.u32 %v372_v56, %v368_v55 }
  0x1c   : > { %v449_v52 = vsel %vm1755_vm3, %v366_v51, 0  ;;  %v380_v0 = vor.u32 %v379_v62, %v375_v61 }
  0x1d   : > { %v450_v58 = vsel %vm1755_vm3, %v373_v57, 0 }
  0x1e   : > { %v451_v3 = vsel %vm1755_vm3, %v380_v0, 0 }
  0x1f   : > { %1517 = vmatmul.msk.bf16.gmra.mxu2 %vm481_vm0, %v1592_v15  ;;  %1495 = vmatmul.msk.bf16.gmra.mxu1 %vm481_vm0, %v1591_v4  ;;  %v1600_v4 = vld [vmem:[%s1749_s28 + $0x50] sm:$0xff] }
  0x20   : > { %v384_v8 = vshll.u32 %v1600_v4, 16  ;;  %v382_v16 = vshrl.u32 %v1600_v4, 16 }
  0x26   : > { %1475 = vmatmul.msk.bf16.gmra.mxu0 %vm481_vm0, %v443_v17  ;;  %1539 = vmatmul.msk.bf16.gmra.mxu3 %vm481_vm0, %v444_v22  ;;  %v386_v17 = vrot.slane %v384_v8, 1 }
  0x2f   : > { %1518 = vmatmul.msk.bf16.gmra.mxu2 %vm481_vm0, %v1593_v23  ;;  %1496 = vmatmul.msk.bf16.gmra.mxu1 %vm481_vm0, %v1592_v15 }
  0x36   : > { %1476 = vmatmul.msk.bf16.gmra.mxu0 %vm481_vm0, %v444_v22  ;;  %1540 = vmatmul.msk.bf16.gmra.mxu3 %vm481_vm0, %v445_v28  ;;  %v387_v22 = vor.u32 %v386_v17, %v382_v16 }
  0x38   : > { %v452_v30 = vsel %vm1755_vm3, %v387_v22, 0 }
  0x3f   : > { %1519 = vmatmul.msk.bf16.gmra.mxu2 %vm481_vm0, %v1594_v29  ;;  %1497 = vmatmul.msk.bf16.gmra.mxu1 %vm481_vm0, %v1593_v23 }
  0x46   : > { %1477 = vmatmul.msk.bf16.gmra.mxu0 %vm481_vm0, %v445_v28  ;;  %1541 = vmatmul.msk.bf16.gmra.mxu3 %vm481_vm0, %v446_v34 }
  0x4f   : > { %1520 = vmatmul.msk.bf16.gmra.mxu2 %vm481_vm0, %v1595_v35  ;;  %1498 = vmatmul.msk.bf16.gmra.mxu1 %vm481_vm0, %v1594_v29 }
  0x56   : > { %1478 = vmatmul.msk.bf16.gmra.mxu0 %vm481_vm0, %v446_v34  ;;  %1542 = vmatmul.msk.bf16.gmra.mxu3 %vm481_vm0, %v447_v40 }
  0x5f   : > { %1521 = vmatmul.msk.bf16.gmra.mxu2 %vm481_vm0, %v1596_v41  ;;  %1499 = vmatmul.msk.bf16.gmra.mxu1 %vm481_vm0, %v1595_v35 }
  0x66   : > { %1479 = vmatmul.msk.bf16.gmra.mxu0 %vm481_vm0, %v447_v40  ;;  %1543 = vmatmul.msk.bf16.gmra.mxu3 %vm481_vm0, %v448_v46 }
  0x6f   : > { %1522 = vmatmul.msk.bf16.gmra.mxu2 %vm481_vm0, %v1597_v47  ;;  %1500 = vmatmul.msk.bf16.gmra.mxu1 %vm481_vm0, %v1596_v41 }
  0x76   : > { %1480 = vmatmul.msk.bf16.gmra.mxu0 %vm481_vm0, %v448_v46  ;;  %1544 = vmatmul.msk.bf16.gmra.mxu3 %vm481_vm0, %v449_v52  ;;  %v389_v46 = vshrl.u32 %v1839_v31, 16 }
  0x7f   : > { %1523 = vmatmul.msk.bf16.gmra.mxu2 %vm481_vm0, %v1598_v53  ;;  %1501 = vmatmul.msk.bf16.gmra.mxu1 %vm481_vm0, %v1597_v47  ;;  %v393_v47 = vrot.slane %v391_v37, 1 }
  0x81   : > { %v394_v54 = vor.u32 %v393_v47, %v389_v46 }
  0x83   : > { %v453_v0 = vsel %vm1755_vm3, %v394_v54, 0 }
  0x86   : > { %1481 = vmatmul.msk.bf16.gmra.mxu0 %vm481_vm0, %v449_v52  ;;  %1545 = vmatmul.msk.bf16.gmra.mxu3 %vm481_vm0, %v450_v58 }
  0x8c   : > { %v666_v63 = vpop.f32.mrf.mxu1 }
  0x8f   : > { %1524 = vmatmul.msk.bf16.gmra.mxu2 %vm481_vm0, %v1599_v59  ;;  %1502 = vmatmul.msk.bf16.gmra.mxu1 %vm481_vm0, %v1598_v53 }
  0x92   : > { %v766_v1 = vpop.f32.mrf.mxu2 }
  0x93   : > { %v539_v2 = vpop.f32.mrf.mxu0 }
  0x94   : > { %v667_v5 = vadd.f32 %v666_v63, %v539_v2  ;;  %v668_v6 = vpop.f32.mrf.mxu1 }
  0x96   : > { %1482 = vmatmul.msk.bf16.gmra.mxu0 %vm481_vm0, %v450_v58  ;;  %1546 = vmatmul.msk.bf16.gmra.mxu3 %vm481_vm0, %v451_v3  ;;  %v846_v7 = vadd.f32 %v766_v1, %v667_v5  ;;  %v1864_v1 = vld [vmem:[%s1749_s28 + $0x60] sm:$0xff] }
  0x99   : > { %v899_v10 = vpop.f32.mrf.mxu3 }
  0x9a   : > { %v979_v11 = vadd.f32 %v899_v10, %v846_v7  ;;  %v768_v14 = vpop.f32.mrf.mxu2  ;;  %v398_v10 = vshll.u32 %v1864_v1, 16 }
  0x9b   : > { %v541_v15 = vpop.f32.mrf.mxu0 }
  0x9c   : > { %v1015_v18 = vmul.f32 %v1825_v9, %v979_v11  ;;  %v669_v19 = vadd.f32 %v668_v6, %v541_v15  ;;  %v671_v20 = vpop.f32.mrf.mxu1  ;;  %v400_v22 = vrot.slane %v398_v10, 1 }
  0x9e   : > { %v1051_v21 = vadd.f32 %v1830_v13, %v1015_v18  ;;  %v847_v24 = vadd.f32 %v768_v14, %v669_v19 }
  0x9f   : > { %1525 = vmatmul.msk.bf16.gmra.mxu2 %vm481_vm0, %v1600_v4  ;;  %1503 = vmatmul.msk.bf16.gmra.mxu1 %vm481_vm0, %v1599_v59 }
  0xa0   : > { %v1115_v23 = vmin.f32 %v1051_v21, 0.0  ;;  %vm1083_vm4 = vcmp.gt.f32.partialorder %v1051_v21, 0.0 }
  0xa1   : > { %v901_v25 = vpop.f32.mrf.mxu3 }
  0xa2   : > { %v1147_v26 = vmul.f32 1.442695, %v1115_v23  ;;  %v980_v27 = vadd.f32 %v901_v25, %v847_v24  ;;  %v771_v28 = vpop.f32.mrf.mxu2 }
  0xa3   : > { %v544_v29 = vpop.f32.mrf.mxu0 }
  0xa4   : > { %1621 = vpow2.f32 %v1147_v26  ;;  %v1016_v32 = vmul.f32 %v1825_v9, %v980_v27  ;;  %v672_v33 = vadd.f32 %v671_v20, %v544_v29  ;;  %v673_v34 = vpop.f32.mrf.mxu1 }
  0xa6   : > { %v1052_v35 = vadd.f32 %v1830_v13, %v1016_v32  ;;  %1483 = vmatmul.msk.bf16.gmra.mxu0 %vm481_vm0, %v451_v3  ;;  %1547 = vmatmul.msk.bf16.gmra.mxu3 %vm481_vm0, %v452_v30  ;;  %v848_v36 = vadd.f32 %v771_v28, %v672_v33 }
  0xa8   : > { %v1116_v38 = vmin.f32 %v1052_v35, 0.0  ;;  %vm1084_vm6 = vcmp.gt.f32.partialorder %v1052_v35, 0.0 }
  0xa9   : > { %v904_v39 = vpop.f32.mrf.mxu3 }
  0xaa   : > { %v1622_v40 = vpop.eup %1621  ;;  %v1149_v41 = vmul.f32 1.442695, %v1116_v38  ;;  %v981_v42 = vadd.f32 %v904_v39, %v848_v36  ;;  %v773_v43 = vpop.f32.mrf.mxu2 }
  0xab   : > { %v1554_v44 = vadd.f32 -1.0, %v1622_v40  ;;  %v546_v45 = vpop.f32.mrf.mxu0 }
  0xac   : > { %1623 = vpow2.f32 %v1149_v41  ;;  %v1017_v48 = vmul.f32 %v1825_v9, %v981_v42  ;;  %v674_v49 = vadd.f32 %v673_v34, %v546_v45  ;;  %v676_v50 = vpop.f32.mrf.mxu1  ;;  %v1885_v41 = vld [vmem:[%s1749_s28 + $0x68] sm:$0xff] }
  0xad   : > { %v1243_v51 = vsel %vm1083_vm4, %v1051_v21, %v1554_v44  ;;  %v396_v21 = vshrl.u32 %v1864_v1, 16 }
  0xae   : > { %v1275_v52 = vpack.c.bf16 %v1243_v51, %v1243_v51  ;;  %v1053_v53 = vadd.f32 %v1830_v13, %v1017_v48  ;;  %v849_v56 = vadd.f32 %v773_v43, %v674_v49  ;;  %v405_v48 = vshll.u32 %v1885_v41, 16 }
  0xaf   : > { %1526 = vmatmul.msk.bf16.gmra.mxu2 %vm481_vm0, %v1839_v31  ;;  %1504 = vmatmul.msk.bf16.gmra.mxu1 %vm481_vm0, %v1600_v4  ;;  %v401_v29 = vor.u32 %v400_v22, %v396_v21 }
  0xb0   : > { %1308 = vst.msk [vmem:[%s1853_s9] sm:$0xf] %vm1307_vm5, %v1275_v52  ;;  %v1117_v55 = vmin.f32 %v1053_v53, 0.0  ;;  %vm1085_vm7 = vcmp.gt.f32.partialorder %v1053_v53, 0.0 }
  0xb1   : > { %v906_v57 = vpop.f32.mrf.mxu3  ;;  %v454_v40 = vsel %vm1755_vm3, %v401_v29, 0 }
  0xb2   : > { %v1624_v58 = vpop.eup %1623  ;;  %v1151_v59 = vmul.f32 1.442695, %v1117_v55  ;;  %v982_v60 = vadd.f32 %v906_v57, %v849_v56  ;;  %v776_v61 = vpop.f32.mrf.mxu2  ;;  %v403_v57 = vshrl.u32 %v1885_v41, 16 }
  0xb3   : > { %v1555_v62 = vadd.f32 -1.0, %v1624_v58  ;;  %v549_v63 = vpop.f32.mrf.mxu0  ;;  %v407_v58 = vrot.slane %v405_v48, 1 }
  0xb4   : > { %1625 = vpow2.f32 %v1151_v59  ;;  %v1018_v2 = vmul.f32 %v1825_v9, %v982_v60  ;;  %v677_v3 = vadd.f32 %v676_v50, %v549_v63  ;;  %v678_v4 = vpop.f32.mrf.mxu1 }
  0xb5   : > { %v1244_v5 = vsel %vm1084_vm6, %v1052_v35, %v1555_v62 }
  0xb6   : > { %v1276_v6 = vpack.c.bf16 %v1244_v5, %v1244_v5  ;;  %v1054_v7 = vadd.f32 %v1830_v13, %v1018_v2  ;;  %1484 = vmatmul.msk.bf16.gmra.mxu0 %vm481_vm0, %v452_v30  ;;  %1548 = vmatmul.msk.bf16.gmra.mxu3 %vm481_vm0, %v453_v0  ;;  %v850_v8 = vadd.f32 %v776_v61, %v677_v3 }
  0xb7   : > { %v408_v2 = vor.u32 %v407_v58, %v403_v57 }
  0xb8   : > { %1309 = vst.msk [vmem:[%s1853_s9 + $0x4] sm:$0xf] %vm1307_vm5, %v1276_v6  ;;  %v1118_v11 = vmin.f32 %v1054_v7, 0.0  ;;  %vm1086_vm8 = vcmp.gt.f32.partialorder %v1054_v7, 0.0 }
  0xb9   : > { %v909_v14 = vpop.f32.mrf.mxu3 }
  0xba   : > { %v1626_v15 = vpop.eup %1625  ;;  %v1153_v16 = vmul.f32 1.442695, %v1118_v11  ;;  %v983_v17 = vadd.f32 %v909_v14, %v850_v8  ;;  %v778_v18 = vpop.f32.mrf.mxu2 }
  0xbb   : > { %v1556_v19 = vadd.f32 -1.0, %v1626_v15  ;;  %v551_v20 = vpop.f32.mrf.mxu0  ;;  %v455_v15 = vsel %vm1755_vm3, %v408_v2, 0 }
  0xbc   : > { %1627 = vpow2.f32 %v1153_v16  ;;  %v1019_v23 = vmul.f32 %v1825_v9, %v983_v17  ;;  %v679_v24 = vadd.f32 %v678_v4, %v551_v20  ;;  %v681_v25 = vpop.f32.mrf.mxu1  ;;  %v1906_v16 = vld [vmem:[%s1749_s28 + $0x70] sm:$0xff] }
  0xbd   : > { %v1245_v26 = vsel %vm1085_vm7, %v1053_v53, %v1556_v19 }
  0xbe   : > { %v1277_v27 = vpack.c.bf16 %v1245_v26, %v1245_v26  ;;  %v1055_v28 = vadd.f32 %v1830_v13, %v1019_v23  ;;  %v851_v32 = vadd.f32 %v778_v18, %v679_v24  ;;  %v412_v23 = vshll.u32 %v1906_v16, 16 }
  0xbf   : > { %1527 = vmatmul.msk.bf16.gmra.mxu2 %vm481_vm0, %v1864_v1  ;;  %1505 = vmatmul.msk.bf16.gmra.mxu1 %vm481_vm0, %v1839_v31 }
  0xc0   : > { %1310 = vst.msk [vmem:[%s1853_s9 + $0x8] sm:$0xf] %vm1307_vm5, %v1277_v27  ;;  %v1119_v30 = vmin.f32 %v1055_v28, 0.0  ;;  %vm1087_vm9 = vcmp.gt.f32.partialorder %v1055_v28, 0.0 }
  0xc1   : > { %v911_v33 = vpop.f32.mrf.mxu3 }
  0xc2   : > { %v1628_v34 = vpop.eup %1627  ;;  %v1155_v35 = vmul.f32 1.442695, %v1119_v30  ;;  %v984_v36 = vadd.f32 %v911_v33, %v851_v32  ;;  %v781_v37 = vpop.f32.mrf.mxu2  ;;  %v410_v33 = vshrl.u32 %v1906_v16, 16 }
  0xc3   : > { %v1557_v38 = vadd.f32 -1.0, %v1628_v34  ;;  %v554_v39 = vpop.f32.mrf.mxu0  ;;  %v414_v34 = vrot.slane %v412_v23, 1 }
  0xc4   : > { %1629 = vpow2.f32 %v1155_v35  ;;  %v1020_v31 = vmul.f32 %v1825_v9, %v984_v36  ;;  %v682_v42 = vadd.f32 %v681_v25, %v554_v39  ;;  %v683_v43 = vpop.f32.mrf.mxu1 }
  0xc5   : > { %v1246_v44 = vsel %vm1086_vm8, %v1054_v7, %v1557_v38 }
  0xc6   : > { %v1278_v45 = vpack.c.bf16 %v1246_v44, %v1246_v44  ;;  %v1056_v46 = vadd.f32 %v1830_v13, %v1020_v31  ;;  %1485 = vmatmul.msk.bf16.gmra.mxu0 %vm481_vm0, %v453_v0  ;;  %1549 = vmatmul.msk.bf16.gmra.mxu3 %vm481_vm0, %v454_v40  ;;  %v852_v47 = vadd.f32 %v781_v37, %v682_v42 }
  0xc7   : > { %v415_v31 = vor.u32 %v414_v34, %v410_v33 }
  0xc8   : > { %1311 = vst.msk [vmem:[%s1853_s9 + $0xc] sm:$0xf] %vm1307_vm5, %v1278_v45  ;;  %v1120_v49 = vmin.f32 %v1056_v46, 0.0  ;;  %vm1088_vm10 = vcmp.gt.f32.partialorder %v1056_v46, 0.0 }
  0xc9   : > { %v914_v50 = vpop.f32.mrf.mxu3 }
  0xca   : > { %v1630_v51 = vpop.eup %1629  ;;  %v1157_v52 = vmul.f32 1.442695, %v1120_v49  ;;  %v985_v53 = vadd.f32 %v914_v50, %v852_v47  ;;  %v783_v54 = vpop.f32.mrf.mxu2 }
  0xcb   : > { %v1558_v55 = vadd.f32 -1.0, %v1630_v51  ;;  %v556_v56 = vpop.f32.mrf.mxu0  ;;  %v456_v51 = vsel %vm1755_vm3, %v415_v31, 0 }
  0xcc   : > { %1631 = vpow2.f32 %v1157_v52  ;;  %v1021_v59 = vmul.f32 %v1825_v9, %v985_v53  ;;  %v684_v60 = vadd.f32 %v683_v43, %v556_v56  ;;  %v686_v61 = vpop.f32.mrf.mxu1  ;;  %v1927_v52 = vld [vmem:[%s1749_s28 + $0x78] sm:$0xff] }
  0xcd   : > { %v1247_v62 = vsel %vm1087_vm9, %v1055_v28, %v1558_v55 }
  0xce   : > { %v1279_v63 = vpack.c.bf16 %v1247_v62, %v1247_v62  ;;  %v1057_v0 = vadd.f32 %v1830_v13, %v1021_v59  ;;  %v853_v4 = vadd.f32 %v783_v54, %v684_v60  ;;  %v419_v59 = vshll.u32 %v1927_v52, 16 }
  0xcf   : > { %1528 = vmatmul.msk.bf16.gmra.mxu2 %vm481_vm0, %v1885_v41  ;;  %1506 = vmatmul.msk.bf16.gmra.mxu1 %vm481_vm0, %v1864_v1 }
  0xd0   : > { %1312 = vst.msk [vmem:[%s1853_s9 + $0x10] sm:$0xf] %vm1307_vm5, %v1279_v63  ;;  %v1121_v3 = vmin.f32 %v1057_v0, 0.0  ;;  %vm1089_vm11 = vcmp.gt.f32.partialorder %v1057_v0, 0.0 }
  0xd1   : > { %v916_v5 = vpop.f32.mrf.mxu3 }
  0xd2   : > { %v1632_v6 = vpop.eup %1631  ;;  %v1159_v7 = vmul.f32 1.442695, %v1121_v3  ;;  %v986_v8 = vadd.f32 %v916_v5, %v853_v4  ;;  %v786_v10 = vpop.f32.mrf.mxu2  ;;  %v417_v5 = vshrl.u32 %v1927_v52, 16 }
  0xd3   : > { %v1559_v11 = vadd.f32 -1.0, %v1632_v6  ;;  %v559_v14 = vpop.f32.mrf.mxu0  ;;  %v421_v6 = vrot.slane %v419_v59, 1 }
  0xd4   : > { %1633 = vpow2.f32 %v1159_v7  ;;  %v1022_v1 = vmul.f32 %v1825_v9, %v986_v8  ;;  %v687_v17 = vadd.f32 %v686_v61, %v559_v14  ;;  %v688_v18 = vpop.f32.mrf.mxu1 }
  0xd5   : > { %v1248_v19 = vsel %vm1088_vm10, %v1056_v46, %v1559_v11 }
  0xd6   : > { %v1280_v20 = vpack.c.bf16 %v1248_v19, %v1248_v19  ;;  %v1058_v21 = vadd.f32 %v1830_v13, %v1022_v1  ;;  %1486 = vmatmul.msk.bf16.gmra.mxu0 %vm481_vm0, %v454_v40  ;;  %1550 = vmatmul.msk.bf16.gmra.mxu3 %vm481_vm0, %v455_v15  ;;  %v854_v22 = vadd.f32 %v786_v10, %v687_v17  ;;  %v1695_v17 = vmov 0  }
  0xd7   : > { %v422_v1 = vor.u32 %v421_v6, %v417_v5 }
  0xd8   : > { %1313 = vst.msk [vmem:[%s1853_s9 + $0x14] sm:$0xf] %vm1307_vm5, %v1280_v20  ;;  %v1122_v24 = vmin.f32 %v1058_v21, 0.0  ;;  %vm1090_vm12 = vcmp.gt.f32.partialorder %v1058_v21, 0.0 }
  0xd9   : > { %v919_v25 = vpop.f32.mrf.mxu3 }
  0xda   : > { %v1634_v26 = vpop.eup %1633  ;;  %v1161_v27 = vmul.f32 1.442695, %v1122_v24  ;;  %v987_v28 = vadd.f32 %v919_v25, %v854_v22  ;;  %v788_v29 = vpop.f32.mrf.mxu2 }
  0xdb   : > { %v1560_v30 = vadd.f32 -1.0, %v1634_v26  ;;  %v561_v32 = vpop.f32.mrf.mxu0 }
  0xdc   : > { %1635 = vpow2.f32 %v1161_v27  ;;  %v1023_v35 = vmul.f32 %v1825_v9, %v987_v28  ;;  %v689_v36 = vadd.f32 %v688_v18, %v561_v32  ;;  %v691_v37 = vpop.f32.mrf.mxu1  ;;  %v459_v18 = vunpack.c.l.b16 %v1695_v17 }
  0xdd   : > { %v1249_v38 = vsel %vm1089_vm11, %v1057_v0, %v1560_v30  ;;  %v457_v28 = vsel %vm1755_vm3, %v422_v1, 0 }
  0xde   : > { %v1281_v39 = vpack.c.bf16 %v1249_v38, %v1249_v38  ;;  %v1059_v40 = vadd.f32 %v1830_v13, %v1023_v35  ;;  %v855_v43 = vadd.f32 %v788_v29, %v689_v36  ;;  %v460_v29 = vpack.c.b16 %v459_v18, %v459_v18 }
  0xdf   : > { %1529 = vmatmul.msk.bf16.gmra.mxu2 %vm481_vm0, %v1906_v16  ;;  %1507 = vmatmul.msk.bf16.gmra.mxu1 %vm481_vm0, %v1885_v41 }
  0xe0   : > { %1314 = vst.msk [vmem:[%s1853_s9 + $0x18] sm:$0xf] %vm1307_vm5, %v1281_v39  ;;  %v1123_v42 = vmin.f32 %v1059_v40, 0.0  ;;  %vm1091_vm13 = vcmp.gt.f32.partialorder %v1059_v40, 0.0 }
  0xe1   : > { %v921_v44 = vpop.f32.mrf.mxu3 }
  0xe2   : > { %v1636_v45 = vpop.eup %1635  ;;  %v1163_v46 = vmul.f32 1.442695, %v1123_v42  ;;  %v988_v47 = vadd.f32 %v921_v44, %v855_v43  ;;  %v791_v48 = vpop.f32.mrf.mxu2 }
  0xe3   : > { %v1561_v49 = vadd.f32 -1.0, %v1636_v45  ;;  %v564_v50 = vpop.f32.mrf.mxu0 }
  0xe4   : > { %1637 = vpow2.f32 %v1163_v46  ;;  %v1024_v41 = vmul.f32 %v1825_v9, %v988_v47  ;;  %v692_v53 = vadd.f32 %v691_v37, %v564_v50  ;;  %v693_v54 = vpop.f32.mrf.mxu1  ;;  %v464_v37 = vshll.u32 %v460_v29, 16 }
  0xe5   : > { %v1250_v55 = vsel %vm1090_vm12, %v1058_v21, %v1561_v49  ;;  %v462_v46 = vshrl.u32 %v460_v29, 16 }
  0xe6   : > { %v1282_v56 = vpack.c.bf16 %v1250_v55, %v1250_v55  ;;  %v1060_v57 = vadd.f32 %v1830_v13, %v1024_v41  ;;  %1487 = vmatmul.msk.bf16.gmra.mxu0 %vm481_vm0, %v455_v15  ;;  %1551 = vmatmul.msk.bf16.gmra.mxu3 %vm481_vm0, %v456_v51  ;;  %v856_v58 = vadd.f32 %v791_v48, %v692_v53  ;;  %v466_v47 = vrot.slane %v464_v37, 1 }
  0xe8   : > { %1315 = vst.msk [vmem:[%s1853_s9 + $0x1c] sm:$0xf] %vm1307_vm5, %v1282_v56  ;;  %v1124_v60 = vmin.f32 %v1060_v57, 0.0  ;;  %vm1092_vm14 = vcmp.gt.f32.partialorder %v1060_v57, 0.0 }
  0xe9   : > { %v924_v61 = vpop.f32.mrf.mxu3 }
  0xea   : > { %v1638_v62 = vpop.eup %1637  ;;  %v1165_v63 = vmul.f32 1.442695, %v1124_v60  ;;  %v989_v0 = vadd.f32 %v924_v61, %v856_v58  ;;  %v793_v2 = vpop.f32.mrf.mxu2 }
  0xeb   : > { %v1562_v3 = vadd.f32 -1.0, %v1638_v62  ;;  %v566_v4 = vpop.f32.mrf.mxu0 }
  0xec   : > { %1639 = vpow2.f32 %v1165_v63  ;;  %v1025_v7 = vmul.f32 %v1825_v9, %v989_v0  ;;  %v694_v8 = vadd.f32 %v693_v54, %v566_v4  ;;  %v696_v10 = vpop.f32.mrf.mxu1  ;;  %v467_v54 = vor.u32 %v466_v47, %v462_v46 }
  0xed   : > { %v1251_v11 = vsel %vm1091_vm13, %v1059_v40, %v1562_v3 }
  0xee   : > { %v1283_v14 = vpack.c.bf16 %v1251_v11, %v1251_v11  ;;  %v1061_v15 = vadd.f32 %v1830_v13, %v1025_v7  ;;  %v857_v20 = vadd.f32 %v793_v2, %v694_v8  ;;  %v469_v0 = vsel %vm1755_vm3, %v467_v54, 0 }
  0xef   : > { %1530 = vmatmul.msk.bf16.gmra.mxu2 %vm481_vm0, %v1927_v52  ;;  %1508 = vmatmul.msk.bf16.gmra.mxu1 %vm481_vm0, %v1906_v16 }
  0xf0   : > { %1316 = vst.msk [vmem:[%s1853_s9 + $0x20] sm:$0xf] %vm1307_vm5, %v1283_v14  ;;  %v1125_v19 = vmin.f32 %v1061_v15, 0.0  ;;  %vm1093_vm15 = vcmp.gt.f32.partialorder %v1061_v15, 0.0 }
  0xf1   : > { %v926_v21 = vpop.f32.mrf.mxu3 }
  0xf2   : > { %v1640_v22 = vpop.eup %1639  ;;  %v1167_v23 = vmul.f32 1.442695, %v1125_v19  ;;  %v990_v24 = vadd.f32 %v926_v21, %v857_v20  ;;  %v796_v25 = vpop.f32.mrf.mxu2 }
  0xf3   : > { %v1563_v26 = vadd.f32 -1.0, %v1640_v22  ;;  %v569_v27 = vpop.f32.mrf.mxu0 }
  0xf4   : > { %1641 = vpow2.f32 %v1167_v23  ;;  %v1026_v16 = vmul.f32 %v1825_v9, %v990_v24  ;;  %v697_v30 = vadd.f32 %v696_v10, %v569_v27  ;;  %v698_v32 = vpop.f32.mrf.mxu1 }
  0xf5   : > { %v1252_v33 = vsel %vm1092_vm14, %v1060_v57, %v1563_v26 }
  0xf6   : > { %v1284_v34 = vpack.c.bf16 %v1252_v33, %v1252_v33  ;;  %v1062_v35 = vadd.f32 %v1830_v13, %v1026_v16  ;;  %1488 = vmatmul.msk.bf16.gmra.mxu0 %vm481_vm0, %v456_v51  ;;  %1552 = vmatmul.msk.bf16.gmra.mxu3 %vm481_vm0, %v457_v28  ;;  %v858_v36 = vadd.f32 %v796_v25, %v697_v30 }
  0xf8   : > { %1317 = vst.msk [vmem:[%s1853_s9 + $0x24] sm:$0xf] %vm1307_vm5, %v1284_v34  ;;  %v1126_v38 = vmin.f32 %v1062_v35, 0.0  ;;  %vm1094_vm1 = vcmp.gt.f32.partialorder %v1062_v35, 0.0 }
  0xf9   : > { %v929_v39 = vpop.f32.mrf.mxu3 }
  0xfa   : > { %v1642_v40 = vpop.eup %1641  ;;  %v1169_v31 = vmul.f32 1.442695, %v1126_v38  ;;  %v991_v42 = vadd.f32 %v929_v39, %v858_v36  ;;  %v798_v43 = vpop.f32.mrf.mxu2 }
  0xfb   : > { %v1564_v44 = vadd.f32 -1.0, %v1642_v40  ;;  %v571_v45 = vpop.f32.mrf.mxu0 }
  0xfc   : > { %1643 = vpow2.f32 %v1169_v31  ;;  %v1027_v48 = vmul.f32 %v1825_v9, %v991_v42  ;;  %v699_v49 = vadd.f32 %v698_v32, %v571_v45  ;;  %v701_v50 = vpop.f32.mrf.mxu1 }
  0xfd   : > { %v1253_v51 = vsel %vm1093_vm15, %v1061_v15, %v1564_v44 }
  0xfe   : > { %v1285_v41 = vpack.c.bf16 %v1253_v51, %v1253_v51  ;;  %v1063_v53 = vadd.f32 %v1830_v13, %v1027_v48  ;;  %v859_v56 = vadd.f32 %v798_v43, %v699_v49 }
  0xff   : > { %1531 = vmatmul.msk.bf16.gmra.mxu2 %vm481_vm0, %v460_v29  ;;  %1509 = vmatmul.msk.bf16.gmra.mxu1 %vm481_vm0, %v1927_v52 }
 0x100   : > { %1318 = vst.msk [vmem:[%s1853_s9 + $0x28] sm:$0xf] %vm1307_vm5, %v1285_v41  ;;  %v1127_v55 = vmin.f32 %v1063_v53, 0.0  ;;  %vm1095_vm2 = vcmp.gt.f32.partialorder %v1063_v53, 0.0 }
 0x101   : > { %v931_v57 = vpop.f32.mrf.mxu3 }
 0x102   : > { %v1644_v58 = vpop.eup %1643  ;;  %v1171_v59 = vmul.f32 1.442695, %v1127_v55  ;;  %v992_v60 = vadd.f32 %v931_v57, %v859_v56  ;;  %v801_v61 = vpop.f32.mrf.mxu2 }
 0x103   : > { %v1565_v62 = vadd.f32 -1.0, %v1644_v58  ;;  %v574_v63 = vpop.f32.mrf.mxu0 }
 0x104   : > { %1645 = vpow2.f32 %v1171_v59  ;;  %v1028_v52 = vmul.f32 %v1825_v9, %v992_v60  ;;  %v702_v2 = vadd.f32 %v701_v50, %v574_v63  ;;  %v703_v3 = vpop.f32.mrf.mxu1 }
 0x105   : > { %v1254_v4 = vsel %vm1094_vm1, %v1062_v35, %v1565_v62 }
 0x106   : > { %v1286_v5 = vpack.c.bf16 %v1254_v4, %v1254_v4  ;;  %v1064_v6 = vadd.f32 %v1830_v13, %v1028_v52  ;;  %1489 = vmatmul.msk.bf16.gmra.mxu0 %vm481_vm0, %v457_v28  ;;  %1553 = vmatmul.msk.bf16.gmra.mxu3 %vm481_vm0, %v469_v0  ;;  %v860_v7 = vadd.f32 %v801_v61, %v702_v2 }
 0x108   : > { %1319 = vst.msk [vmem:[%s1853_s9 + $0x2c] sm:$0xf] %vm1307_vm5, %v1286_v5  ;;  %v1128_v8 = vmin.f32 %v1064_v6, 0.0  ;;  %vm1096_vm0 = vcmp.gt.f32.partialorder %v1064_v6, 0.0 }
 0x109   : > { %v934_v12 = vpop.f32.mrf.mxu3 }
 0x10a   : > { %v1646_v10 = vpop.eup %1645  ;;  %v1173_v11 = vmul.f32 1.442695, %v1128_v8  ;;  %v993_v14 = vadd.f32 %v934_v12, %v860_v7  ;;  %v803_v15 = vpop.f32.mrf.mxu2 }
 0x10b   : > { %v1566_v1 = vadd.f32 -1.0, %v1646_v10  ;;  %v576_v17 = vpop.f32.mrf.mxu0 }
 0x10c   : > { %1647 = vpow2.f32 %v1173_v11  ;;  %v1029_v18 = vmul.f32 %v1825_v9, %v993_v14  ;;  %v704_v19 = vadd.f32 %v703_v3, %v576_v17  ;;  %v706_v20 = vpop.f32.mrf.mxu1 }
 0x10d   : > { %v1255_v21 = vsel %vm1095_vm2, %v1063_v53, %v1566_v1 }
 0x10e   : > { %v1287_v22 = vpack.c.bf16 %v1255_v21, %v1255_v21  ;;  %v1065_v23 = vadd.f32 %v1830_v13, %v1029_v18  ;;  %v861_v25 = vadd.f32 %v803_v15, %v704_v19 }
 0x110   : > { %1320 = vst.msk [vmem:[%s1853_s9 + $0x30] sm:$0xf] %vm1307_vm5, %v1287_v22  ;;  %v1129_v24 = vmin.f32 %v1065_v23, 0.0  ;;  %vm1097_vm3 = vcmp.gt.f32.partialorder %v1065_v23, 0.0 }
 0x111   : > { %v936_v26 = vpop.f32.mrf.mxu3 }
 0x112   : > { %v1648_v27 = vpop.eup %1647  ;;  %v1175_v28 = vmul.f32 1.442695, %v1129_v24  ;;  %v994_v29 = vadd.f32 %v936_v26, %v861_v25  ;;  %v806_v16 = vpop.f32.mrf.mxu2 }
 0x113   : > { %v1567_v30 = vadd.f32 -1.0, %v1648_v27  ;;  %v579_v32 = vpop.f32.mrf.mxu0 }
 0x114   : > { %1649 = vpow2.f32 %v1175_v28  ;;  %v1030_v33 = vmul.f32 %v1825_v9, %v994_v29  ;;  %v707_v34 = vadd.f32 %v706_v20, %v579_v32  ;;  %v708_v35 = vpop.f32.mrf.mxu1 }
 0x115   : > { %v1256_v36 = vsel %vm1096_vm0, %v1064_v6, %v1567_v30 }
 0x116   : > { %v1288_v37 = vpack.c.bf16 %v1256_v36, %v1256_v36  ;;  %v1066_v38 = vadd.f32 %v1830_v13, %v1030_v33  ;;  %v862_v39 = vadd.f32 %v806_v16, %v707_v34 }
 0x118   : > { %1321 = vst.msk [vmem:[%s1853_s9 + $0x34] sm:$0xf] %vm1307_vm5, %v1288_v37  ;;  %v1130_v40 = vmin.f32 %v1066_v38, 0.0  ;;  %vm1098_vm4 = vcmp.gt.f32.partialorder %v1066_v38, 0.0 }
 0x119   : > { %v939_v31 = vpop.f32.mrf.mxu3 }
 0x11a   : > { %v1650_v42 = vpop.eup %1649  ;;  %v1177_v43 = vmul.f32 1.442695, %v1130_v40  ;;  %v995_v44 = vadd.f32 %v939_v31, %v862_v39  ;;  %v808_v45 = vpop.f32.mrf.mxu2 }
 0x11b   : > { %v1568_v46 = vadd.f32 -1.0, %v1650_v42  ;;  %v581_v47 = vpop.f32.mrf.mxu0 }
 0x11c   : > { %1651 = vpow2.f32 %v1177_v43  ;;  %v1031_v48 = vmul.f32 %v1825_v9, %v995_v44  ;;  %v709_v49 = vadd.f32 %v708_v35, %v581_v47  ;;  %v711_v50 = vpop.f32.mrf.mxu1 }
 0x11d   : > { %v1257_v51 = vsel %vm1097_vm3, %v1065_v23, %v1568_v46 }
 0x11e   : > { %v1289_v41 = vpack.c.bf16 %v1257_v51, %v1257_v51  ;;  %v1067_v53 = vadd.f32 %v1830_v13, %v1031_v48  ;;  %v863_v55 = vadd.f32 %v808_v45, %v709_v49 }
 0x120   : > { %1322 = vst.msk [vmem:[%s1853_s9 + $0x38] sm:$0xf] %vm1307_vm5, %v1289_v41  ;;  %v1131_v54 = vmin.f32 %v1067_v53, 0.0  ;;  %vm1099_vm6 = vcmp.gt.f32.partialorder %v1067_v53, 0.0 }
 0x121   : > { %v941_v56 = vpop.f32.mrf.mxu3 }
 0x122   : > { %v1652_v57 = vpop.eup %1651  ;;  %v1179_v58 = vmul.f32 1.442695, %v1131_v54  ;;  %v996_v59 = vadd.f32 %v941_v56, %v863_v55  ;;  %v811_v60 = vpop.f32.mrf.mxu2 }
 0x123   : > { %v1569_v61 = vadd.f32 -1.0, %v1652_v57  ;;  %v584_v62 = vpop.f32.mrf.mxu0 }
 0x124   : > { %1653 = vpow2.f32 %v1179_v58  ;;  %v1032_v63 = vmul.f32 %v1825_v9, %v996_v59  ;;  %v712_v0 = vadd.f32 %v711_v50, %v584_v62  ;;  %v713_v52 = vpop.f32.mrf.mxu1 }
 0x125   : > { %v1258_v2 = vsel %vm1098_vm4, %v1066_v38, %v1569_v61 }
 0x126   : > { %v1290_v3 = vpack.c.bf16 %v1258_v2, %v1258_v2  ;;  %v1068_v4 = vadd.f32 %v1830_v13, %v1032_v63  ;;  %v864_v5 = vadd.f32 %v811_v60, %v712_v0 }
 0x128   : > { %1323 = vst.msk [vmem:[%s1853_s9 + $0x3c] sm:$0xf] %vm1307_vm5, %v1290_v3  ;;  %v1132_v6 = vmin.f32 %v1068_v4, 0.0  ;;  %vm1100_vm7 = vcmp.gt.f32.partialorder %v1068_v4, 0.0 }
 0x129   : > { %v944_v7 = vpop.f32.mrf.mxu3 }
 0x12a   : > { %v1654_v8 = vpop.eup %1653  ;;  %v1181_v12 = vmul.f32 1.442695, %v1132_v6  ;;  %v997_v10 = vadd.f32 %v944_v7, %v864_v5  ;;  %v813_v11 = vpop.f32.mrf.mxu2 }
 0x12b   : > { %v1570_v14 = vadd.f32 -1.0, %v1654_v8  ;;  %v586_v15 = vpop.f32.mrf.mxu0 }
 0x12c   : > { %1655 = vpow2.f32 %v1181_v12  ;;  %v1033_v1 = vmul.f32 %v1825_v9, %v997_v10  ;;  %v714_v17 = vadd.f32 %v713_v52, %v586_v15  ;;  %v716_v18 = vpop.f32.mrf.mxu1 }
 0x12d   : > { %v1259_v19 = vsel %vm1099_vm6, %v1067_v53, %v1570_v14 }
 0x12e   : > { %v1291_v20 = vpack.c.bf16 %v1259_v19, %v1259_v19  ;;  %v1069_v21 = vadd.f32 %v1830_v13, %v1033_v1  ;;  %v865_v23 = vadd.f32 %v813_v11, %v714_v17 }
 0x130   : > { %1324 = vst.msk [vmem:[%s1853_s9 + $0x40] sm:$0xf] %vm1307_vm5, %v1291_v20  ;;  %v1133_v22 = vmin.f32 %v1069_v21, 0.0  ;;  %vm1101_vm8 = vcmp.gt.f32.partialorder %v1069_v21, 0.0 }
 0x131   : > { %v946_v24 = vpop.f32.mrf.mxu3 }
 0x132   : > { %v1656_v25 = vpop.eup %1655  ;;  %v1183_v26 = vmul.f32 1.442695, %v1133_v22  ;;  %v998_v27 = vadd.f32 %v946_v24, %v865_v23  ;;  %v816_v28 = vpop.f32.mrf.mxu2 }
 0x133   : > { %v1571_v29 = vadd.f32 -1.0, %v1656_v25  ;;  %v589_v16 = vpop.f32.mrf.mxu0 }
 0x134   : > { %1657 = vpow2.f32 %v1183_v26  ;;  %v1034_v30 = vmul.f32 %v1825_v9, %v998_v27  ;;  %v717_v32 = vadd.f32 %v716_v18, %v589_v16  ;;  %v718_v33 = vpop.f32.mrf.mxu1 }
 0x135   : > { %v1260_v34 = vsel %vm1100_vm7, %v1068_v4, %v1571_v29 }
 0x136   : > { %v1292_v35 = vpack.c.bf16 %v1260_v34, %v1260_v34  ;;  %v1070_v36 = vadd.f32 %v1830_v13, %v1034_v30  ;;  %v866_v37 = vadd.f32 %v816_v28, %v717_v32 }
 0x138   : > { %1325 = vst.msk [vmem:[%s1853_s9 + $0x44] sm:$0xf] %vm1307_vm5, %v1292_v35  ;;  %v1134_v38 = vmin.f32 %v1070_v36, 0.0  ;;  %vm1102_vm9 = vcmp.gt.f32.partialorder %v1070_v36, 0.0 }
 0x139   : > { %v949_v39 = vpop.f32.mrf.mxu3 }
 0x13a   : > { %v1658_v40 = vpop.eup %1657  ;;  %v1185_v31 = vmul.f32 1.442695, %v1134_v38  ;;  %v999_v42 = vadd.f32 %v949_v39, %v866_v37  ;;  %v818_v43 = vpop.f32.mrf.mxu2 }
 0x13b   : > { %v1572_v44 = vadd.f32 -1.0, %v1658_v40  ;;  %v591_v45 = vpop.f32.mrf.mxu0 }
 0x13c   : > { %1659 = vpow2.f32 %v1185_v31  ;;  %v1035_v46 = vmul.f32 %v1825_v9, %v999_v42  ;;  %v719_v47 = vadd.f32 %v718_v33, %v591_v45  ;;  %v721_v48 = vpop.f32.mrf.mxu1 }
 0x13d   : > { %v1261_v49 = vsel %vm1101_vm8, %v1069_v21, %v1572_v44 }
 0x13e   : > { %v1293_v50 = vpack.c.bf16 %v1261_v49, %v1261_v49  ;;  %v1071_v51 = vadd.f32 %v1830_v13, %v1035_v46  ;;  %v867_v53 = vadd.f32 %v818_v43, %v719_v47 }
 0x140   : > { %1326 = vst.msk [vmem:[%s1853_s9 + $0x48] sm:$0xf] %vm1307_vm5, %v1293_v50  ;;  %v1135_v41 = vmin.f32 %v1071_v51, 0.0  ;;  %vm1103_vm10 = vcmp.gt.f32.partialorder %v1071_v51, 0.0 }
 0x141   : > { %v951_v54 = vpop.f32.mrf.mxu3 }
 0x142   : > { %v1660_v55 = vpop.eup %1659  ;;  %v1187_v56 = vmul.f32 1.442695, %v1135_v41  ;;  %v1000_v57 = vadd.f32 %v951_v54, %v867_v53  ;;  %v821_v58 = vpop.f32.mrf.mxu2 }
 0x143   : > { %v1573_v59 = vadd.f32 -1.0, %v1660_v55  ;;  %v594_v60 = vpop.f32.mrf.mxu0 }
 0x144   : > { %1661 = vpow2.f32 %v1187_v56  ;;  %v1036_v61 = vmul.f32 %v1825_v9, %v1000_v57  ;;  %v722_v62 = vadd.f32 %v721_v48, %v594_v60  ;;  %v723_v63 = vpop.f32.mrf.mxu1 }
 0x145   : > { %v1262_v0 = vsel %vm1102_vm9, %v1070_v36, %v1573_v59 }
 0x146   : > { %v1294_v52 = vpack.c.bf16 %v1262_v0, %v1262_v0  ;;  %v1072_v2 = vadd.f32 %v1830_v13, %v1036_v61  ;;  %v868_v3 = vadd.f32 %v821_v58, %v722_v62 }
 0x148   : > { %1327 = vst.msk [vmem:[%s1853_s9 + $0x4c] sm:$0xf] %vm1307_vm5, %v1294_v52  ;;  %v1136_v4 = vmin.f32 %v1072_v2, 0.0  ;;  %vm1104_vm11 = vcmp.gt.f32.partialorder %v1072_v2, 0.0 }
 0x149   : > { %v954_v5 = vpop.f32.mrf.mxu3 }
 0x14a   : > { %v1662_v6 = vpop.eup %1661  ;;  %v1189_v7 = vmul.f32 1.442695, %v1136_v4  ;;  %v1001_v8 = vadd.f32 %v954_v5, %v868_v3  ;;  %v823_v12 = vpop.f32.mrf.mxu2 }
 0x14b   : > { %v1574_v10 = vadd.f32 -1.0, %v1662_v6  ;;  %v596_v11 = vpop.f32.mrf.mxu0 }
 0x14c   : > { %1663 = vpow2.f32 %v1189_v7  ;;  %v1037_v14 = vmul.f32 %v1825_v9, %v1001_v8  ;;  %v724_v15 = vadd.f32 %v723_v63, %v596_v11  ;;  %v726_v1 = vpop.f32.mrf.mxu1  ;;  %v2021_v63 = vld [vmem:[%s2060_s3] ss:$0 sm:$0xff] }
 0x14d   : > { %v1263_v17 = vsel %vm1103_vm10, %v1071_v51, %v1574_v10 }
 0x14e   : > { %v1295_v18 = vpack.c.bf16 %v1263_v17, %v1263_v17  ;;  %v1073_v19 = vadd.f32 %v1830_v13, %v1037_v14  ;;  %v869_v21 = vadd.f32 %v823_v12, %v724_v15 }
 0x150   : > { %1328 = vst.msk [vmem:[%s1853_s9 + $0x50] sm:$0xf] %vm1307_vm5, %v1295_v18  ;;  %v1137_v20 = vmin.f32 %v1073_v19, 0.0  ;;  %vm1105_vm12 = vcmp.gt.f32.partialorder %v1073_v19, 0.0 }
 0x151   : > { %v956_v22 = vpop.f32.mrf.mxu3 }
 0x152   : > { %v1664_v23 = vpop.eup %1663  ;;  %v1191_v24 = vmul.f32 1.442695, %v1137_v20  ;;  %v1002_v25 = vadd.f32 %v956_v22, %v869_v21  ;;  %v826_v26 = vpop.f32.mrf.mxu2 }
 0x153   : > { %v1575_v27 = vadd.f32 -1.0, %v1664_v23  ;;  %v599_v28 = vpop.f32.mrf.mxu0 }
 0x154   : > { %1665 = vpow2.f32 %v1191_v24  ;;  %v1038_v29 = vmul.f32 %v1825_v9, %v1002_v25  ;;  %v727_v16 = vadd.f32 %v726_v1, %v599_v28  ;;  %v728_v30 = vpop.f32.mrf.mxu1 }
 0x155   : > { %v1264_v32 = vsel %vm1104_vm11, %v1072_v2, %v1575_v27 }
 0x156   : > { %v1296_v33 = vpack.c.bf16 %v1264_v32, %v1264_v32  ;;  %v1074_v34 = vadd.f32 %v1830_v13, %v1038_v29  ;;  %v870_v35 = vadd.f32 %v826_v26, %v727_v16 }
 0x158   : > { %1329 = vst.msk [vmem:[%s1853_s9 + $0x54] sm:$0xf] %vm1307_vm5, %v1296_v33  ;;  %v1138_v36 = vmin.f32 %v1074_v34, 0.0  ;;  %vm1106_vm13 = vcmp.gt.f32.partialorder %v1074_v34, 0.0 }
 0x159   : > { %v959_v37 = vpop.f32.mrf.mxu3 }
 0x15a   : > { %v1666_v38 = vpop.eup %1665  ;;  %v1193_v39 = vmul.f32 1.442695, %v1138_v36  ;;  %v1003_v40 = vadd.f32 %v959_v37, %v870_v35  ;;  %v828_v31 = vpop.f32.mrf.mxu2 }
 0x15b   : > { %v1576_v42 = vadd.f32 -1.0, %v1666_v38  ;;  %v601_v43 = vpop.f32.mrf.mxu0 }
 0x15c   : > { %1667 = vpow2.f32 %v1193_v39  ;;  %v1039_v44 = vmul.f32 %v1825_v9, %v1003_v40  ;;  %v729_v45 = vadd.f32 %v728_v30, %v601_v43  ;;  %v731_v46 = vpop.f32.mrf.mxu1  ;;  %v2015_v9 = vld [vmem:[%s2059_s2] ss:$0 sm:$0xff] }
 0x15d   : > { %v1265_v47 = vsel %vm1105_vm12, %v1073_v19, %v1576_v42 }
 0x15e   : > { %v1297_v48 = vpack.c.bf16 %v1265_v47, %v1265_v47  ;;  %v1075_v49 = vadd.f32 %v1830_v13, %v1039_v44  ;;  %v871_v51 = vadd.f32 %v828_v31, %v729_v45 }
 0x160   : > { %1330 = vst.msk [vmem:[%s1853_s9 + $0x58] sm:$0xf] %vm1307_vm5, %v1297_v48  ;;  %v1139_v50 = vmin.f32 %v1075_v49, 0.0  ;;  %vm1107_vm14 = vcmp.gt.f32.partialorder %v1075_v49, 0.0 }
 0x161   : > { %v961_v41 = vpop.f32.mrf.mxu3 }
 0x162   : > { %v1668_v53 = vpop.eup %1667  ;;  %v1195_v54 = vmul.f32 1.442695, %v1139_v50  ;;  %v1004_v55 = vadd.f32 %v961_v41, %v871_v51  ;;  %v831_v56 = vpop.f32.mrf.mxu2 }
 0x163   : > { %v1577_v57 = vadd.f32 -1.0, %v1668_v53  ;;  %v604_v58 = vpop.f32.mrf.mxu0 }
 0x164   : > { %1669 = vpow2.f32 %v1195_v54  ;;  %v1040_v13 = vmul.f32 %v2015_v9, %v1004_v55  ;;  %v732_v59 = vadd.f32 %v731_v46, %v604_v58  ;;  %v733_v60 = vpop.f32.mrf.mxu1 }
 0x165   : > { %v1266_v61 = vsel %vm1106_vm13, %v1074_v34, %v1577_v57 }
 0x166   : > { %v1298_v62 = vpack.c.bf16 %v1266_v61, %v1266_v61  ;;  %v1076_v0 = vadd.f32 %v2021_v63, %v1040_v13  ;;  %v872_v52 = vadd.f32 %v831_v56, %v732_v59 }
 0x168   : > { %1331 = vst.msk [vmem:[%s1853_s9 + $0x5c] sm:$0xf] %vm1307_vm5, %v1298_v62  ;;  %v1140_v2 = vmin.f32 %v1076_v0, 0.0  ;;  %vm1108_vm15 = vcmp.gt.f32.partialorder %v1076_v0, 0.0 }
 0x169   : > { %v964_v3 = vpop.f32.mrf.mxu3 }
 0x16a   : > { %v1670_v4 = vpop.eup %1669  ;;  %v1197_v5 = vmul.f32 1.442695, %v1140_v2  ;;  %v1005_v6 = vadd.f32 %v964_v3, %v872_v52  ;;  %v833_v7 = vpop.f32.mrf.mxu2 }
 0x16b   : > { %v1578_v8 = vadd.f32 -1.0, %v1670_v4  ;;  %v606_v12 = vpop.f32.mrf.mxu0 }
 0x16c   : > { %1671 = vpow2.f32 %v1197_v5  ;;  %v1041_v10 = vmul.f32 %v2015_v9, %v1005_v6  ;;  %v734_v11 = vadd.f32 %v733_v60, %v606_v12  ;;  %v736_v15 = vpop.f32.mrf.mxu1 }
 0x16d   : > { %v1267_v14 = vsel %vm1107_vm14, %v1075_v49, %v1578_v8 }
 0x16e   : > { %v1299_v1 = vpack.c.bf16 %v1267_v14, %v1267_v14  ;;  %v1077_v17 = vadd.f32 %v2021_v63, %v1041_v10  ;;  %v873_v19 = vadd.f32 %v833_v7, %v734_v11 }
 0x170   : > { %1332 = vst.msk [vmem:[%s1853_s9 + $0x60] sm:$0xf] %vm1307_vm5, %v1299_v1  ;;  %v1141_v18 = vmin.f32 %v1077_v17, 0.0  ;;  %vm1109_vm1 = vcmp.gt.f32.partialorder %v1077_v17, 0.0 }
 0x171   : > { %v966_v20 = vpop.f32.mrf.mxu3 }
 0x172   : > { %v1672_v21 = vpop.eup %1671  ;;  %v1199_v22 = vmul.f32 1.442695, %v1141_v18  ;;  %v1006_v23 = vadd.f32 %v966_v20, %v873_v19  ;;  %v836_v24 = vpop.f32.mrf.mxu2 }
 0x173   : > { %v1579_v25 = vadd.f32 -1.0, %v1672_v21  ;;  %v609_v26 = vpop.f32.mrf.mxu0 }
 0x174   : > { %1673 = vpow2.f32 %v1199_v22  ;;  %v1042_v27 = vmul.f32 %v2015_v9, %v1006_v23  ;;  %v737_v28 = vadd.f32 %v736_v15, %v609_v26  ;;  %v738_v33 = vpop.f32.mrf.mxu1 }
 0x175   : > { %v1268_v29 = vsel %vm1108_vm15, %v1076_v0, %v1579_v25 }
 0x176   : > { %v1300_v16 = vpack.c.bf16 %v1268_v29, %v1268_v29  ;;  %v1078_v30 = vadd.f32 %v2021_v63, %v1042_v27  ;;  %v874_v32 = vadd.f32 %v836_v24, %v737_v28 }
 0x178   : > { %1333 = vst.msk [vmem:[%s1853_s9 + $0x64] sm:$0xf] %vm1307_vm5, %v1300_v16  ;;  %v1142_v34 = vmin.f32 %v1078_v30, 0.0  ;;  %vm1110_vm2 = vcmp.gt.f32.partialorder %v1078_v30, 0.0 }
 0x179   : > { %v969_v35 = vpop.f32.mrf.mxu3 }
 0x17a   : > { %v1674_v36 = vpop.eup %1673  ;;  %v1201_v37 = vmul.f32 1.442695, %v1142_v34  ;;  %v1007_v38 = vadd.f32 %v969_v35, %v874_v32  ;;  %v838_v40 = vpop.f32.mrf.mxu2 }
 0x17b   : > { %v1580_v39 = vadd.f32 -1.0, %v1674_v36  ;;  %v611_v31 = vpop.f32.mrf.mxu0 }
 0x17c   : > { %1675 = vpow2.f32 %v1201_v37  ;;  %v1043_v42 = vmul.f32 %v2015_v9, %v1007_v38  ;;  %v739_v43 = vadd.f32 %v738_v33, %v611_v31  ;;  %v741_v49 = vpop.f32.mrf.mxu1 }
 0x17d   : > { %v1269_v44 = vsel %vm1109_vm1, %v1077_v17, %v1580_v39 }
 0x17e   : > { %v1301_v45 = vpack.c.bf16 %v1269_v44, %v1269_v44  ;;  %v1079_v46 = vadd.f32 %v2021_v63, %v1043_v42  ;;  %v875_v48 = vadd.f32 %v838_v40, %v739_v43 }
 0x180   : > { %1334 = vst.msk [vmem:[%s1853_s9 + $0x68] sm:$0xf] %vm1307_vm5, %v1301_v45  ;;  %v1143_v47 = vmin.f32 %v1079_v46, 0.0  ;;  %vm1111_vm0 = vcmp.gt.f32.partialorder %v1079_v46, 0.0 }
 0x181   : > { %v971_v50 = vpop.f32.mrf.mxu3 }
 0x182   : > { %v1676_v51 = vpop.eup %1675  ;;  %v1203_v41 = vmul.f32 1.442695, %v1143_v47  ;;  %v1008_v53 = vadd.f32 %v971_v50, %v875_v48  ;;  %v841_v13 = vpop.f32.mrf.mxu2 }
 0x183   : > { %v1581_v54 = vadd.f32 -1.0, %v1676_v51  ;;  %v614_v55 = vpop.f32.mrf.mxu0 }
 0x184   : > { %1677 = vpow2.f32 %v1203_v41  ;;  %v1044_v56 = vmul.f32 %v2015_v9, %v1008_v53  ;;  %v742_v57 = vadd.f32 %v741_v49, %v614_v55  ;;  %v743_v5 = vpop.f32.mrf.mxu1 }
 0x185   : > { %v1270_v58 = vsel %vm1110_vm2, %v1078_v30, %v1581_v54 }
 0x186   : > { %v1302_v59 = vpack.c.bf16 %v1270_v58, %v1270_v58  ;;  %v1080_v60 = vadd.f32 %v2021_v63, %v1044_v56  ;;  %v876_v61 = vadd.f32 %v841_v13, %v742_v57 }
 0x188   : > { %1335 = vst.msk [vmem:[%s1853_s9 + $0x6c] sm:$0xf] %vm1307_vm5, %v1302_v59  ;;  %v1144_v62 = vmin.f32 %v1080_v60, 0.0  ;;  %vm1112_vm3 = vcmp.gt.f32.partialorder %v1080_v60, 0.0 }
 0x189   : > { %v974_v0 = vpop.f32.mrf.mxu3 }
 0x18a   : > { %v1678_v52 = vpop.eup %1677  ;;  %v1205_v2 = vmul.f32 1.442695, %v1144_v62  ;;  %v1009_v3 = vadd.f32 %v974_v0, %v876_v61  ;;  %v843_v14 = vpop.f32.mrf.mxu2 }
 0x18b   : > { %v1582_v4 = vadd.f32 -1.0, %v1678_v52  ;;  %v616_v6 = vpop.f32.mrf.mxu0 }
 0x18c   : > { %1679 = vpow2.f32 %v1205_v2  ;;  %v1045_v7 = vmul.f32 %v2015_v9, %v1009_v3  ;;  %v744_v8 = vadd.f32 %v743_v5, %v616_v6 }
 0x18d   : > { %v1271_v12 = vsel %vm1111_vm0, %v1079_v46, %v1582_v4 }
 0x18e   : > { %v1303_v10 = vpack.c.bf16 %v1271_v12, %v1271_v12  ;;  %v1081_v11 = vadd.f32 %v2021_v63, %v1045_v7  ;;  %v877_v1 = vadd.f32 %v843_v14, %v744_v8 }
 0x190   : > { %1336 = vst.msk [vmem:[%s1853_s9 + $0x70] sm:$0xf] %vm1307_vm5, %v1303_v10  ;;  %v1145_v15 = vmin.f32 %v1081_v11, 0.0  ;;  %vm1113_vm4 = vcmp.gt.f32.partialorder %v1081_v11, 0.0 }
 0x191   : > { %v976_v17 = vpop.f32.mrf.mxu3 }
 0x192   : > { %v1680_v18 = vpop.eup %1679  ;;  %v1207_v19 = vmul.f32 1.442695, %v1145_v15  ;;  %v1010_v20 = vadd.f32 %v976_v17, %v877_v1 }
 0x193   : > { %v1583_v21 = vadd.f32 -1.0, %v1680_v18 }
 0x194   : > { %1681 = vpow2.f32 %v1207_v19  ;;  %v1046_v22 = vmul.f32 %v2015_v9, %v1010_v20 }
 0x195   : > { %v1272_v23 = vsel %vm1112_vm3, %v1080_v60, %v1583_v21 }
 0x196   : > { %v1304_v24 = vpack.c.bf16 %v1272_v23, %v1272_v23  ;;  %v1082_v25 = vadd.f32 %v2021_v63, %v1046_v22 }
 0x198   : > { %1337 = vst.msk [vmem:[%s1853_s9 + $0x74] sm:$0xf] %vm1307_vm5, %v1304_v24  ;;  %v1146_v26 = vmin.f32 %v1082_v25, 0.0  ;;  %vm1114_vm6 = vcmp.gt.f32.partialorder %v1082_v25, 0.0 }
 0x19a   : > { %v1682_v27 = vpop.eup %1681  ;;  %v1209_v28 = vmul.f32 1.442695, %v1146_v26 }
 0x19b   : > { %v1584_v29 = vadd.f32 -1.0, %v1682_v27 }
 0x19c   : > { %1683 = vpow2.f32 %v1209_v28 }
 0x19d   : > { %v1273_v16 = vsel %vm1113_vm4, %v1081_v11, %v1584_v29 }
 0x19e   : > { %v1305_v30 = vpack.c.bf16 %v1273_v16, %v1273_v16 }
 0x1a0   : > { %1338 = vst.msk [vmem:[%s1853_s9 + $0x78] sm:$0xf] %vm1307_vm5, %v1305_v30 }
 0x1a2   : > { %v1684_v32 = vpop.eup %1683 }
 0x1a3   : > { %v1585_v33 = vadd.f32 -1.0, %v1684_v32 }
 0x1a5   : > { %v1274_v9 = vsel %vm1114_vm6, %v1082_v25, %v1585_v33 }
 0x1a6   : > { %v1306_v34 = vpack.c.bf16 %v1274_v9, %v1274_v9 }
 0x1a8   : > { %1339 = vst.msk [vmem:[%s1853_s9 + $0x7c] sm:$0xf] %vm1307_vm5, %v1306_v34 }
 0x1a9 PF: > { %s14_s15 = sadd.s32 1, %s1693_s15  }
 0x1aa   : > { %p11_p4 = scmp.ge.s32.totalorder %s14_s15, 4  }
 0x1ac   :  { %13 = sbr.rel (!%p11_p4) target bundleno = 1 (0x1), region = 69 }

</bundles_post_ra>
